<compile_context>
chip_gen: v7x
topology: tpu7x:2x2x1
jax: 0.10.0
libtpu: 0.0.40
codegen_flags: <defaults>
</compile_context>

<pallas_src>
import functools

import jax
import jax.numpy as jnp
from jax.experimental import pallas as pl
from jax.experimental.pallas import tpu as pltpu

LANES = 128  # padded lanes per gate == padded hidden width Hg


def lstm_head_kernel(x_ref, wih_ref, whh_ref, b_ref,
                     w1_ref, b1_ref, w2_ref, b2_ref, w3_ref, b3_ref,
                     out_ref, *, batch, seq_len, hidden_pad):
    B = batch
    T = seq_len
    Hg = hidden_pad                      # 128: each gate owns one lane group

    # ---- Hoisted input projection: ONE MXU matmul covers all timesteps ----
    # x_ref is time-major (T*B, D); rows [t*B:(t+1)*B] belong to timestep t.
    z_in = (jnp.dot(x_ref[...], wih_ref[...],
                    preferred_element_type=jnp.float32)
            + b_ref[...])                              # (T*B, 4*Hg)

    h = jnp.zeros((B, Hg), jnp.float32)
    c = jnp.zeros((B, Hg), jnp.float32)

    # ---- Recurrence, fully unrolled (T static): only h @ W_hh + gate math
    # remains on the serial critical path.  Gate slices are 128-lane aligned.
    for t in range(T):
        z = z_in[t * B:(t + 1) * B, :] + jnp.dot(
            h, whh_ref[...], preferred_element_type=jnp.float32)  # (B, 4*Hg)
        i = jax.nn.sigmoid(z[:, 0 * Hg:1 * Hg])
        f = jax.nn.sigmoid(z[:, 1 * Hg:2 * Hg])
        g = jnp.tanh(z[:, 2 * Hg:3 * Hg])
        o = jax.nn.sigmoid(z[:, 3 * Hg:4 * Hg])
        c = f * c + i * g
        h = o * jnp.tanh(c)              # padded lanes stay exactly 0

    # ---- MLP head: linear -> tanh -> linear -> tanh -> linear (padded) ----
    y = jnp.tanh(jnp.dot(h, w1_ref[...],
                         preferred_element_type=jnp.float32) + b1_ref[...])
    y = jnp.tanh(jnp.dot(y, w2_ref[...],
                         preferred_element_type=jnp.float32) + b2_ref[...])
    y = jnp.dot(y, w3_ref[...], preferred_element_type=jnp.float32) + b3_ref[...]
    out_ref[...] = y                     # (B, 1)


def init_params(key, hidden_size, input_size):
    """Deterministic init mimicking PyTorch nn.LSTM / nn.Linear shapes."""
    H, D = hidden_size, input_size
    H2, H4 = H // 2, H // 4
    ks = jax.random.split(key, 12)
    s = 1.0 / jnp.sqrt(H)

    # nn.LSTM params (torch shapes), gate order i,f,g,o.
    w_ih = jax.random.uniform(ks[0], (4 * H, D), jnp.float32, -s, s)
    w_hh = jax.random.uniform(ks[1], (4 * H, H), jnp.float32, -s, s)
    b_ih = jax.random.uniform(ks[2], (4 * H,), jnp.float32, -s, s)
    b_hh = jax.random.uniform(ks[3], (4 * H,), jnp.float32, -s, s)

    def linear(kw, kb, n_in, n_out):
        lim = 1.0 / jnp.sqrt(n_in)
        w = jax.random.uniform(kw, (n_out, n_in), jnp.float32, -lim, lim)
        b = jax.random.uniform(kb, (n_out,), jnp.float32, -lim, lim)
        return w, b

    w1, b1 = linear(ks[4], ks[5], H, H2)
    w2, b2 = linear(ks[6], ks[7], H2, H4)
    w3, b3 = linear(ks[8], ks[9], H4, 1)

    return dict(
        wih_t=w_ih.T,                          # (D, 4H)
        whh_t=w_hh.T,                          # (H, 4H)
        b=(b_ih + b_hh).reshape(1, 4 * H),     # (1, 4H)
        w1_t=w1.T, b1=b1.reshape(1, H2),
        w2_t=w2.T, b2=b2.reshape(1, H4),
        w3_t=w3.T, b3=b3.reshape(1, 1),
    )


def pad_params_for_kernel(p, hidden_size):
    """Zero-pad weights so every gate / head activation is 128-lane aligned.

    Padding is pure layout: zero weight columns + zero biases keep all padded
    lanes of z, h, c and the head activations identically zero, so the first
    H lanes reproduce the unpadded math bit-for-bit (up to f32 rounding).
    Done once, outside the kernel's hot path.
    """
    H = hidden_size
    Hg = LANES

    def pad_gate_cols(w):                      # (rows, 4H) -> (rows, 4Hg)
        rows = w.shape[0]
        out = jnp.zeros((rows, 4 * Hg), jnp.float32)
        for k in range(4):
            out = out.at[:, k * Hg:k * Hg + H].set(w[:, k * H:(k + 1) * H])
        return out

    def pad2(w, rp, cp):                       # zero-pad a 2-D array
        r, c = w.shape
        return jnp.zeros((rp, cp), jnp.float32).at[:r, :c].set(w)

    return dict(
        wih=pad_gate_cols(p["wih_t"]),                      # (D, 4Hg)
        whh=pad2(pad_gate_cols(p["whh_t"]), Hg, 4 * Hg),    # (Hg, 4Hg)
        b=pad_gate_cols(p["b"]),                            # (1, 4Hg)
        w1=pad2(p["w1_t"], Hg, LANES),                      # (Hg, 128)
        b1=pad2(p["b1"], 1, LANES),                         # (1, 128)
        w2=pad2(p["w2_t"], LANES, LANES),                   # (128, 128)
        b2=pad2(p["b2"], 1, LANES),                         # (1, 128)
        w3=pad2(p["w3_t"], LANES, 1),                       # (128, 1)
        b3=p["b3"],                                         # (1, 1)
    )


def lstm_forward(x_btd, kparams, hidden_pad=LANES):
    """x_btd: (B, T, D) float32, batch_first like the PyTorch module."""
    B, T, D = x_btd.shape
    # Time-major, flattened to (T*B, D) so the kernel can do a single input
    # projection matmul; negligible one-time layout op at these shapes.
    x_flat = jnp.transpose(x_btd, (1, 0, 2)).reshape(T * B, D)

    vmem = pl.BlockSpec(memory_space=pltpu.MemorySpace.VMEM)
    kernel = functools.partial(lstm_head_kernel,
                               batch=B, seq_len=T, hidden_pad=hidden_pad)
    return pl.pallas_call(
        kernel,
        out_shape=jax.ShapeDtypeStruct((B, 1), jnp.float32),
        in_specs=[vmem] * 10,
        out_specs=vmem,
    )(x_flat,
      kparams["wih"], kparams["whh"], kparams["b"],
      kparams["w1"], kparams["b1"],
      kparams["w2"], kparams["b2"],
      kparams["w3"], kparams["b3"])


def lstm_forward_ref(x_btd, params, hidden_size):
    """Pure-JAX reference (unpadded params) matching PyTorch semantics."""
    H = hidden_size
    B, T, D = x_btd.shape
    h = jnp.zeros((B, H), jnp.float32)
    c = jnp.zeros((B, H), jnp.float32)
    for t in range(T):
        z = x_btd[:, t, :] @ params["wih_t"] + h @ params["whh_t"] + params["b"]
        i = jax.nn.sigmoid(z[:, 0 * H:1 * H])
        f = jax.nn.sigmoid(z[:, 1 * H:2 * H])
        g = jnp.tanh(z[:, 2 * H:3 * H])
        o = jax.nn.sigmoid(z[:, 3 * H:4 * H])
        c = f * c + i * g
        h = o * jnp.tanh(c)
    y = jnp.tanh(h @ params["w1_t"] + params["b1"])
    y = jnp.tanh(y @ params["w2_t"] + params["b2"])
    return y @ params["w3_t"] + params["b3"]


if __name__ == "__main__":
    hidden_size = 32
    input_size = 8
    batch = 2
    seq = 8

    key = jax.random.PRNGKey(0)
    k_x, k_p = jax.random.split(key)
    x = jax.random.normal(k_x, (batch, seq, input_size), jnp.float32)

    params = init_params(k_p, hidden_size, input_size)
    kparams = pad_params_for_kernel(params, hidden_size)

    y = lstm_forward(x, kparams)
    y = jax.block_until_ready(y)

    y_ref = lstm_forward_ref(x, params, hidden_size)
    assert y.shape == (batch, 1)
    assert jnp.allclose(y, y_ref, atol=1e-5, rtol=1e-5)

    print("KERNEL_OK")
</pallas_src>

<mosaic_0001>
module attributes {stable_mosaic.version = 11 : i64} {
  func.func @lstm_head_kernel(%arg0: memref<16x8xf32, #tpu.memory_space<vmem>>, %arg1: memref<8x512xf32, #tpu.memory_space<vmem>>, %arg2: memref<128x512xf32, #tpu.memory_space<vmem>>, %arg3: memref<1x512xf32, #tpu.memory_space<vmem>>, %arg4: memref<128x128xf32, #tpu.memory_space<vmem>>, %arg5: memref<1x128xf32, #tpu.memory_space<vmem>>, %arg6: memref<128x128xf32, #tpu.memory_space<vmem>>, %arg7: memref<1x128xf32, #tpu.memory_space<vmem>>, %arg8: memref<128x1xf32, #tpu.memory_space<vmem>>, %arg9: memref<1x1xf32, #tpu.memory_space<vmem>>, %arg10: memref<2x1xf32, #tpu.memory_space<vmem>>) attributes {dimension_semantics = [], scalar_prefetch = 0 : i64, scratch_operands = 0 : i64, tpu.core_type = #tpu.core_type<tc>} {
    %c0 = arith.constant 0 : index
    %c0_0 = arith.constant 0 : index
    %0 = vector.load %arg0[%c0, %c0_0] : memref<16x8xf32, #tpu.memory_space<vmem>>, vector<16x8xf32>
    %c0_1 = arith.constant 0 : index
    %c0_2 = arith.constant 0 : index
    %1 = vector.load %arg1[%c0_1, %c0_2] : memref<8x512xf32, #tpu.memory_space<vmem>>, vector<8x512xf32>
    %cst = arith.constant dense<0.000000e+00> : vector<16x512xf32>
    %2 = tpu.matmul %0, %1, %cst {dimension_numbers = #tpu.dot_dimension_numbers<[1], [0], [0], [1], [0, 0, 1, 1], [], []>} : vector<16x8xf32>, vector<8x512xf32>, vector<16x512xf32> -> vector<16x512xf32>
    %c0_3 = arith.constant 0 : index
    %c0_4 = arith.constant 0 : index
    %3 = vector.load %arg3[%c0_3, %c0_4] : memref<1x512xf32, #tpu.memory_space<vmem>>, vector<1x512xf32>
    %4 = vector.broadcast %3 : vector<1x512xf32> to vector<16x512xf32>
    %5 = arith.addf %2, %4 : vector<16x512xf32>
    %cst_5 = arith.constant 0.000000e+00 : f32
    %6 = vector.broadcast %cst_5 : f32 to vector<2x128xf32>
    %cst_6 = arith.constant 0.000000e+00 : f32
    %7 = vector.broadcast %cst_6 : f32 to vector<2x128xf32>
    %8 = vector.extract_strided_slice %5 {offsets = [0, 0], sizes = [2, 512], strides = [1, 1]} : vector<16x512xf32> to vector<2x512xf32>
    %c0_7 = arith.constant 0 : index
    %c0_8 = arith.constant 0 : index
    %9 = vector.load %arg2[%c0_7, %c0_8] : memref<128x512xf32, #tpu.memory_space<vmem>>, vector<128x512xf32>
    %cst_9 = arith.constant dense<0.000000e+00> : vector<2x512xf32>
    %10 = tpu.matmul %6, %9, %cst_9 {dimension_numbers = #tpu.dot_dimension_numbers<[1], [0], [0], [1], [0, 0, 1, 1], [], []>} : vector<2x128xf32>, vector<128x512xf32>, vector<2x512xf32> -> vector<2x512xf32>
    %11 = arith.addf %8, %10 : vector<2x512xf32>
    %12 = vector.extract_strided_slice %11 {offsets = [0, 0], sizes = [2, 128], strides = [1, 1]} : vector<2x512xf32> to vector<2x128xf32>
    %13 = arith.negf %12 : vector<2x128xf32>
    %14 = math.exp %13 : vector<2x128xf32>
    %cst_10 = arith.constant 1.000000e+00 : f32
    %15 = vector.broadcast %cst_10 : f32 to vector<2x128xf32>
    %16 = arith.addf %15, %14 : vector<2x128xf32>
    %17 = arith.divf %15, %16 : vector<2x128xf32>
    %18 = vector.extract_strided_slice %11 {offsets = [0, 128], sizes = [2, 128], strides = [1, 1]} : vector<2x512xf32> to vector<2x128xf32>
    %19 = arith.negf %18 : vector<2x128xf32>
    %20 = math.exp %19 : vector<2x128xf32>
    %cst_11 = arith.constant 1.000000e+00 : f32
    %21 = vector.broadcast %cst_11 : f32 to vector<2x128xf32>
    %22 = arith.addf %21, %20 : vector<2x128xf32>
    %23 = arith.divf %21, %22 : vector<2x128xf32>
    %24 = vector.extract_strided_slice %11 {offsets = [0, 256], sizes = [2, 128], strides = [1, 1]} : vector<2x512xf32> to vector<2x128xf32>
    %25 = math.tanh %24 : vector<2x128xf32>
    %26 = vector.extract_strided_slice %11 {offsets = [0, 384], sizes = [2, 128], strides = [1, 1]} : vector<2x512xf32> to vector<2x128xf32>
    %27 = arith.negf %26 : vector<2x128xf32>
    %28 = math.exp %27 : vector<2x128xf32>
    %cst_12 = arith.constant 1.000000e+00 : f32
    %29 = vector.broadcast %cst_12 : f32 to vector<2x128xf32>
    %30 = arith.addf %29, %28 : vector<2x128xf32>
    %31 = arith.divf %29, %30 : vector<2x128xf32>
    %32 = arith.mulf %23, %7 : vector<2x128xf32>
    %33 = arith.mulf %17, %25 : vector<2x128xf32>
    %34 = arith.addf %32, %33 : vector<2x128xf32>
    %35 = math.tanh %34 : vector<2x128xf32>
    %36 = arith.mulf %31, %35 : vector<2x128xf32>
    %37 = vector.extract_strided_slice %5 {offsets = [2, 0], sizes = [2, 512], strides = [1, 1]} : vector<16x512xf32> to vector<2x512xf32>
    %c0_13 = arith.constant 0 : index
    %c0_14 = arith.constant 0 : index
    %38 = vector.load %arg2[%c0_13, %c0_14] : memref<128x512xf32, #tpu.memory_space<vmem>>, vector<128x512xf32>
    %cst_15 = arith.constant dense<0.000000e+00> : vector<2x512xf32>
    %39 = tpu.matmul %36, %38, %cst_15 {dimension_numbers = #tpu.dot_dimension_numbers<[1], [0], [0], [1], [0, 0, 1, 1], [], []>} : vector<2x128xf32>, vector<128x512xf32>, vector<2x512xf32> -> vector<2x512xf32>
    %40 = arith.addf %37, %39 : vector<2x512xf32>
    %41 = vector.extract_strided_slice %40 {offsets = [0, 0], sizes = [2, 128], strides = [1, 1]} : vector<2x512xf32> to vector<2x128xf32>
    %42 = arith.negf %41 : vector<2x128xf32>
    %43 = math.exp %42 : vector<2x128xf32>
    %cst_16 = arith.constant 1.000000e+00 : f32
    %44 = vector.broadcast %cst_16 : f32 to vector<2x128xf32>
    %45 = arith.addf %44, %43 : vector<2x128xf32>
    %46 = arith.divf %44, %45 : vector<2x128xf32>
    %47 = vector.extract_strided_slice %40 {offsets = [0, 128], sizes = [2, 128], strides = [1, 1]} : vector<2x512xf32> to vector<2x128xf32>
    %48 = arith.negf %47 : vector<2x128xf32>
    %49 = math.exp %48 : vector<2x128xf32>
    %cst_17 = arith.constant 1.000000e+00 : f32
    %50 = vector.broadcast %cst_17 : f32 to vector<2x128xf32>
    %51 = arith.addf %50, %49 : vector<2x128xf32>
    %52 = arith.divf %50, %51 : vector<2x128xf32>
    %53 = vector.extract_strided_slice %40 {offsets = [0, 256], sizes = [2, 128], strides = [1, 1]} : vector<2x512xf32> to vector<2x128xf32>
    %54 = math.tanh %53 : vector<2x128xf32>
    %55 = vector.extract_strided_slice %40 {offsets = [0, 384], sizes = [2, 128], strides = [1, 1]} : vector<2x512xf32> to vector<2x128xf32>
    %56 = arith.negf %55 : vector<2x128xf32>
    %57 = math.exp %56 : vector<2x128xf32>
    %cst_18 = arith.constant 1.000000e+00 : f32
    %58 = vector.broadcast %cst_18 : f32 to vector<2x128xf32>
    %59 = arith.addf %58, %57 : vector<2x128xf32>
    %60 = arith.divf %58, %59 : vector<2x128xf32>
    %61 = arith.mulf %52, %34 : vector<2x128xf32>
    %62 = arith.mulf %46, %54 : vector<2x128xf32>
    %63 = arith.addf %61, %62 : vector<2x128xf32>
    %64 = math.tanh %63 : vector<2x128xf32>
    %65 = arith.mulf %60, %64 : vector<2x128xf32>
    %66 = vector.extract_strided_slice %5 {offsets = [4, 0], sizes = [2, 512], strides = [1, 1]} : vector<16x512xf32> to vector<2x512xf32>
    %c0_19 = arith.constant 0 : index
    %c0_20 = arith.constant 0 : index
    %67 = vector.load %arg2[%c0_19, %c0_20] : memref<128x512xf32, #tpu.memory_space<vmem>>, vector<128x512xf32>
    %cst_21 = arith.constant dense<0.000000e+00> : vector<2x512xf32>
    %68 = tpu.matmul %65, %67, %cst_21 {dimension_numbers = #tpu.dot_dimension_numbers<[1], [0], [0], [1], [0, 0, 1, 1], [], []>} : vector<2x128xf32>, vector<128x512xf32>, vector<2x512xf32> -> vector<2x512xf32>
    %69 = arith.addf %66, %68 : vector<2x512xf32>
    %70 = vector.extract_strided_slice %69 {offsets = [0, 0], sizes = [2, 128], strides = [1, 1]} : vector<2x512xf32> to vector<2x128xf32>
    %71 = arith.negf %70 : vector<2x128xf32>
    %72 = math.exp %71 : vector<2x128xf32>
    %cst_22 = arith.constant 1.000000e+00 : f32
    %73 = vector.broadcast %cst_22 : f32 to vector<2x128xf32>
    %74 = arith.addf %73, %72 : vector<2x128xf32>
    %75 = arith.divf %73, %74 : vector<2x128xf32>
    %76 = vector.extract_strided_slice %69 {offsets = [0, 128], sizes = [2, 128], strides = [1, 1]} : vector<2x512xf32> to vector<2x128xf32>
    %77 = arith.negf %76 : vector<2x128xf32>
    %78 = math.exp %77 : vector<2x128xf32>
    %cst_23 = arith.constant 1.000000e+00 : f32
    %79 = vector.broadcast %cst_23 : f32 to vector<2x128xf32>
    %80 = arith.addf %79, %78 : vector<2x128xf32>
    %81 = arith.divf %79, %80 : vector<2x128xf32>
    %82 = vector.extract_strided_slice %69 {offsets = [0, 256], sizes = [2, 128], strides = [1, 1]} : vector<2x512xf32> to vector<2x128xf32>
    %83 = math.tanh %82 : vector<2x128xf32>
    %84 = vector.extract_strided_slice %69 {offsets = [0, 384], sizes = [2, 128], strides = [1, 1]} : vector<2x512xf32> to vector<2x128xf32>
    %85 = arith.negf %84 : vector<2x128xf32>
    %86 = math.exp %85 : vector<2x128xf32>
    %cst_24 = arith.constant 1.000000e+00 : f32
    %87 = vector.broadcast %cst_24 : f32 to vector<2x128xf32>
    %88 = arith.addf %87, %86 : vector<2x128xf32>
    %89 = arith.divf %87, %88 : vector<2x128xf32>
    %90 = arith.mulf %81, %63 : vector<2x128xf32>
    %91 = arith.mulf %75, %83 : vector<2x128xf32>
    %92 = arith.addf %90, %91 : vector<2x128xf32>
    %93 = math.tanh %92 : vector<2x128xf32>
    %94 = arith.mulf %89, %93 : vector<2x128xf32>
    %95 = vector.extract_strided_slice %5 {offsets = [6, 0], sizes = [2, 512], strides = [1, 1]} : vector<16x512xf32> to vector<2x512xf32>
    %c0_25 = arith.constant 0 : index
    %c0_26 = arith.constant 0 : index
    %96 = vector.load %arg2[%c0_25, %c0_26] : memref<128x512xf32, #tpu.memory_space<vmem>>, vector<128x512xf32>
    %cst_27 = arith.constant dense<0.000000e+00> : vector<2x512xf32>
    %97 = tpu.matmul %94, %96, %cst_27 {dimension_numbers = #tpu.dot_dimension_numbers<[1], [0], [0], [1], [0, 0, 1, 1], [], []>} : vector<2x128xf32>, vector<128x512xf32>, vector<2x512xf32> -> vector<2x512xf32>
    %98 = arith.addf %95, %97 : vector<2x512xf32>
    %99 = vector.extract_strided_slice %98 {offsets = [0, 0], sizes = [2, 128], strides = [1, 1]} : vector<2x512xf32> to vector<2x128xf32>
    %100 = arith.negf %99 : vector<2x128xf32>
    %101 = math.exp %100 : vector<2x128xf32>
    %cst_28 = arith.constant 1.000000e+00 : f32
    %102 = vector.broadcast %cst_28 : f32 to vector<2x128xf32>
    %103 = arith.addf %102, %101 : vector<2x128xf32>
    %104 = arith.divf %102, %103 : vector<2x128xf32>
    %105 = vector.extract_strided_slice %98 {offsets = [0, 128], sizes = [2, 128], strides = [1, 1]} : vector<2x512xf32> to vector<2x128xf32>
    %106 = arith.negf %105 : vector<2x128xf32>
    %107 = math.exp %106 : vector<2x128xf32>
    %cst_29 = arith.constant 1.000000e+00 : f32
    %108 = vector.broadcast %cst_29 : f32 to vector<2x128xf32>
    %109 = arith.addf %108, %107 : vector<2x128xf32>
    %110 = arith.divf %108, %109 : vector<2x128xf32>
    %111 = vector.extract_strided_slice %98 {offsets = [0, 256], sizes = [2, 128], strides = [1, 1]} : vector<2x512xf32> to vector<2x128xf32>
    %112 = math.tanh %111 : vector<2x128xf32>
    %113 = vector.extract_strided_slice %98 {offsets = [0, 384], sizes = [2, 128], strides = [1, 1]} : vector<2x512xf32> to vector<2x128xf32>
    %114 = arith.negf %113 : vector<2x128xf32>
    %115 = math.exp %114 : vector<2x128xf32>
    %cst_30 = arith.constant 1.000000e+00 : f32
    %116 = vector.broadcast %cst_30 : f32 to vector<2x128xf32>
    %117 = arith.addf %116, %115 : vector<2x128xf32>
    %118 = arith.divf %116, %117 : vector<2x128xf32>
    %119 = arith.mulf %110, %92 : vector<2x128xf32>
    %120 = arith.mulf %104, %112 : vector<2x128xf32>
    %121 = arith.addf %119, %120 : vector<2x128xf32>
    %122 = math.tanh %121 : vector<2x128xf32>
    %123 = arith.mulf %118, %122 : vector<2x128xf32>
    %124 = vector.extract_strided_slice %5 {offsets = [8, 0], sizes = [2, 512], strides = [1, 1]} : vector<16x512xf32> to vector<2x512xf32>
    %c0_31 = arith.constant 0 : index
    %c0_32 = arith.constant 0 : index
    %125 = vector.load %arg2[%c0_31, %c0_32] : memref<128x512xf32, #tpu.memory_space<vmem>>, vector<128x512xf32>
    %cst_33 = arith.constant dense<0.000000e+00> : vector<2x512xf32>
    %126 = tpu.matmul %123, %125, %cst_33 {dimension_numbers = #tpu.dot_dimension_numbers<[1], [0], [0], [1], [0, 0, 1, 1], [], []>} : vector<2x128xf32>, vector<128x512xf32>, vector<2x512xf32> -> vector<2x512xf32>
    %127 = arith.addf %124, %126 : vector<2x512xf32>
    %128 = vector.extract_strided_slice %127 {offsets = [0, 0], sizes = [2, 128], strides = [1, 1]} : vector<2x512xf32> to vector<2x128xf32>
    %129 = arith.negf %128 : vector<2x128xf32>
    %130 = math.exp %129 : vector<2x128xf32>
    %cst_34 = arith.constant 1.000000e+00 : f32
    %131 = vector.broadcast %cst_34 : f32 to vector<2x128xf32>
    %132 = arith.addf %131, %130 : vector<2x128xf32>
    %133 = arith.divf %131, %132 : vector<2x128xf32>
    %134 = vector.extract_strided_slice %127 {offsets = [0, 128], sizes = [2, 128], strides = [1, 1]} : vector<2x512xf32> to vector<2x128xf32>
    %135 = arith.negf %134 : vector<2x128xf32>
    %136 = math.exp %135 : vector<2x128xf32>
    %cst_35 = arith.constant 1.000000e+00 : f32
    %137 = vector.broadcast %cst_35 : f32 to vector<2x128xf32>
    %138 = arith.addf %137, %136 : vector<2x128xf32>
    %139 = arith.divf %137, %138 : vector<2x128xf32>
    %140 = vector.extract_strided_slice %127 {offsets = [0, 256], sizes = [2, 128], strides = [1, 1]} : vector<2x512xf32> to vector<2x128xf32>
    %141 = math.tanh %140 : vector<2x128xf32>
    %142 = vector.extract_strided_slice %127 {offsets = [0, 384], sizes = [2, 128], strides = [1, 1]} : vector<2x512xf32> to vector<2x128xf32>
    %143 = arith.negf %142 : vector<2x128xf32>
    %144 = math.exp %143 : vector<2x128xf32>
    %cst_36 = arith.constant 1.000000e+00 : f32
    %145 = vector.broadcast %cst_36 : f32 to vector<2x128xf32>
    %146 = arith.addf %145, %144 : vector<2x128xf32>
    %147 = arith.divf %145, %146 : vector<2x128xf32>
    %148 = arith.mulf %139, %121 : vector<2x128xf32>
    %149 = arith.mulf %133, %141 : vector<2x128xf32>
    %150 = arith.addf %148, %149 : vector<2x128xf32>
    %151 = math.tanh %150 : vector<2x128xf32>
    %152 = arith.mulf %147, %151 : vector<2x128xf32>
    %153 = vector.extract_strided_slice %5 {offsets = [10, 0], sizes = [2, 512], strides = [1, 1]} : vector<16x512xf32> to vector<2x512xf32>
    %c0_37 = arith.constant 0 : index
    %c0_38 = arith.constant 0 : index
    %154 = vector.load %arg2[%c0_37, %c0_38] : memref<128x512xf32, #tpu.memory_space<vmem>>, vector<128x512xf32>
    %cst_39 = arith.constant dense<0.000000e+00> : vector<2x512xf32>
    %155 = tpu.matmul %152, %154, %cst_39 {dimension_numbers = #tpu.dot_dimension_numbers<[1], [0], [0], [1], [0, 0, 1, 1], [], []>} : vector<2x128xf32>, vector<128x512xf32>, vector<2x512xf32> -> vector<2x512xf32>
    %156 = arith.addf %153, %155 : vector<2x512xf32>
    %157 = vector.extract_strided_slice %156 {offsets = [0, 0], sizes = [2, 128], strides = [1, 1]} : vector<2x512xf32> to vector<2x128xf32>
    %158 = arith.negf %157 : vector<2x128xf32>
    %159 = math.exp %158 : vector<2x128xf32>
    %cst_40 = arith.constant 1.000000e+00 : f32
    %160 = vector.broadcast %cst_40 : f32 to vector<2x128xf32>
    %161 = arith.addf %160, %159 : vector<2x128xf32>
    %162 = arith.divf %160, %161 : vector<2x128xf32>
    %163 = vector.extract_strided_slice %156 {offsets = [0, 128], sizes = [2, 128], strides = [1, 1]} : vector<2x512xf32> to vector<2x128xf32>
    %164 = arith.negf %163 : vector<2x128xf32>
    %165 = math.exp %164 : vector<2x128xf32>
    %cst_41 = arith.constant 1.000000e+00 : f32
    %166 = vector.broadcast %cst_41 : f32 to vector<2x128xf32>
    %167 = arith.addf %166, %165 : vector<2x128xf32>
    %168 = arith.divf %166, %167 : vector<2x128xf32>
    %169 = vector.extract_strided_slice %156 {offsets = [0, 256], sizes = [2, 128], strides = [1, 1]} : vector<2x512xf32> to vector<2x128xf32>
    %170 = math.tanh %169 : vector<2x128xf32>
    %171 = vector.extract_strided_slice %156 {offsets = [0, 384], sizes = [2, 128], strides = [1, 1]} : vector<2x512xf32> to vector<2x128xf32>
    %172 = arith.negf %171 : vector<2x128xf32>
    %173 = math.exp %172 : vector<2x128xf32>
    %cst_42 = arith.constant 1.000000e+00 : f32
    %174 = vector.broadcast %cst_42 : f32 to vector<2x128xf32>
    %175 = arith.addf %174, %173 : vector<2x128xf32>
    %176 = arith.divf %174, %175 : vector<2x128xf32>
    %177 = arith.mulf %168, %150 : vector<2x128xf32>
    %178 = arith.mulf %162, %170 : vector<2x128xf32>
    %179 = arith.addf %177, %178 : vector<2x128xf32>
    %180 = math.tanh %179 : vector<2x128xf32>
    %181 = arith.mulf %176, %180 : vector<2x128xf32>
    %182 = vector.extract_strided_slice %5 {offsets = [12, 0], sizes = [2, 512], strides = [1, 1]} : vector<16x512xf32> to vector<2x512xf32>
    %c0_43 = arith.constant 0 : index
    %c0_44 = arith.constant 0 : index
    %183 = vector.load %arg2[%c0_43, %c0_44] : memref<128x512xf32, #tpu.memory_space<vmem>>, vector<128x512xf32>
    %cst_45 = arith.constant dense<0.000000e+00> : vector<2x512xf32>
    %184 = tpu.matmul %181, %183, %cst_45 {dimension_numbers = #tpu.dot_dimension_numbers<[1], [0], [0], [1], [0, 0, 1, 1], [], []>} : vector<2x128xf32>, vector<128x512xf32>, vector<2x512xf32> -> vector<2x512xf32>
    %185 = arith.addf %182, %184 : vector<2x512xf32>
    %186 = vector.extract_strided_slice %185 {offsets = [0, 0], sizes = [2, 128], strides = [1, 1]} : vector<2x512xf32> to vector<2x128xf32>
    %187 = arith.negf %186 : vector<2x128xf32>
    %188 = math.exp %187 : vector<2x128xf32>
    %cst_46 = arith.constant 1.000000e+00 : f32
    %189 = vector.broadcast %cst_46 : f32 to vector<2x128xf32>
    %190 = arith.addf %189, %188 : vector<2x128xf32>
    %191 = arith.divf %189, %190 : vector<2x128xf32>
    %192 = vector.extract_strided_slice %185 {offsets = [0, 128], sizes = [2, 128], strides = [1, 1]} : vector<2x512xf32> to vector<2x128xf32>
    %193 = arith.negf %192 : vector<2x128xf32>
    %194 = math.exp %193 : vector<2x128xf32>
    %cst_47 = arith.constant 1.000000e+00 : f32
    %195 = vector.broadcast %cst_47 : f32 to vector<2x128xf32>
    %196 = arith.addf %195, %194 : vector<2x128xf32>
    %197 = arith.divf %195, %196 : vector<2x128xf32>
    %198 = vector.extract_strided_slice %185 {offsets = [0, 256], sizes = [2, 128], strides = [1, 1]} : vector<2x512xf32> to vector<2x128xf32>
    %199 = math.tanh %198 : vector<2x128xf32>
    %200 = vector.extract_strided_slice %185 {offsets = [0, 384], sizes = [2, 128], strides = [1, 1]} : vector<2x512xf32> to vector<2x128xf32>
    %201 = arith.negf %200 : vector<2x128xf32>
    %202 = math.exp %201 : vector<2x128xf32>
    %cst_48 = arith.constant 1.000000e+00 : f32
    %203 = vector.broadcast %cst_48 : f32 to vector<2x128xf32>
    %204 = arith.addf %203, %202 : vector<2x128xf32>
    %205 = arith.divf %203, %204 : vector<2x128xf32>
    %206 = arith.mulf %197, %179 : vector<2x128xf32>
    %207 = arith.mulf %191, %199 : vector<2x128xf32>
    %208 = arith.addf %206, %207 : vector<2x128xf32>
    %209 = math.tanh %208 : vector<2x128xf32>
    %210 = arith.mulf %205, %209 : vector<2x128xf32>
    %211 = vector.extract_strided_slice %5 {offsets = [14, 0], sizes = [2, 512], strides = [1, 1]} : vector<16x512xf32> to vector<2x512xf32>
    %c0_49 = arith.constant 0 : index
    %c0_50 = arith.constant 0 : index
    %212 = vector.load %arg2[%c0_49, %c0_50] : memref<128x512xf32, #tpu.memory_space<vmem>>, vector<128x512xf32>
    %cst_51 = arith.constant dense<0.000000e+00> : vector<2x512xf32>
    %213 = tpu.matmul %210, %212, %cst_51 {dimension_numbers = #tpu.dot_dimension_numbers<[1], [0], [0], [1], [0, 0, 1, 1], [], []>} : vector<2x128xf32>, vector<128x512xf32>, vector<2x512xf32> -> vector<2x512xf32>
    %214 = arith.addf %211, %213 : vector<2x512xf32>
    %215 = vector.extract_strided_slice %214 {offsets = [0, 0], sizes = [2, 128], strides = [1, 1]} : vector<2x512xf32> to vector<2x128xf32>
    %216 = arith.negf %215 : vector<2x128xf32>
    %217 = math.exp %216 : vector<2x128xf32>
    %cst_52 = arith.constant 1.000000e+00 : f32
    %218 = vector.broadcast %cst_52 : f32 to vector<2x128xf32>
    %219 = arith.addf %218, %217 : vector<2x128xf32>
    %220 = arith.divf %218, %219 : vector<2x128xf32>
    %221 = vector.extract_strided_slice %214 {offsets = [0, 128], sizes = [2, 128], strides = [1, 1]} : vector<2x512xf32> to vector<2x128xf32>
    %222 = arith.negf %221 : vector<2x128xf32>
    %223 = math.exp %222 : vector<2x128xf32>
    %cst_53 = arith.constant 1.000000e+00 : f32
    %224 = vector.broadcast %cst_53 : f32 to vector<2x128xf32>
    %225 = arith.addf %224, %223 : vector<2x128xf32>
    %226 = arith.divf %224, %225 : vector<2x128xf32>
    %227 = vector.extract_strided_slice %214 {offsets = [0, 256], sizes = [2, 128], strides = [1, 1]} : vector<2x512xf32> to vector<2x128xf32>
    %228 = math.tanh %227 : vector<2x128xf32>
    %229 = vector.extract_strided_slice %214 {offsets = [0, 384], sizes = [2, 128], strides = [1, 1]} : vector<2x512xf32> to vector<2x128xf32>
    %230 = arith.negf %229 : vector<2x128xf32>
    %231 = math.exp %230 : vector<2x128xf32>
    %cst_54 = arith.constant 1.000000e+00 : f32
    %232 = vector.broadcast %cst_54 : f32 to vector<2x128xf32>
    %233 = arith.addf %232, %231 : vector<2x128xf32>
    %234 = arith.divf %232, %233 : vector<2x128xf32>
    %235 = arith.mulf %226, %208 : vector<2x128xf32>
    %236 = arith.mulf %220, %228 : vector<2x128xf32>
    %237 = arith.addf %235, %236 : vector<2x128xf32>
    %238 = math.tanh %237 : vector<2x128xf32>
    %239 = arith.mulf %234, %238 : vector<2x128xf32>
    %c0_55 = arith.constant 0 : index
    %c0_56 = arith.constant 0 : index
    %240 = vector.load %arg4[%c0_55, %c0_56] : memref<128x128xf32, #tpu.memory_space<vmem>>, vector<128x128xf32>
    %cst_57 = arith.constant dense<0.000000e+00> : vector<2x128xf32>
    %241 = tpu.matmul %239, %240, %cst_57 {dimension_numbers = #tpu.dot_dimension_numbers<[1], [0], [0], [1], [0, 0, 1, 1], [], []>} : vector<2x128xf32>, vector<128x128xf32>, vector<2x128xf32> -> vector<2x128xf32>
    %c0_58 = arith.constant 0 : index
    %c0_59 = arith.constant 0 : index
    %242 = vector.load %arg5[%c0_58, %c0_59] : memref<1x128xf32, #tpu.memory_space<vmem>>, vector<1x128xf32>
    %243 = vector.broadcast %242 : vector<1x128xf32> to vector<2x128xf32>
    %244 = arith.addf %241, %243 : vector<2x128xf32>
    %245 = math.tanh %244 : vector<2x128xf32>
    %c0_60 = arith.constant 0 : index
    %c0_61 = arith.constant 0 : index
    %246 = vector.load %arg6[%c0_60, %c0_61] : memref<128x128xf32, #tpu.memory_space<vmem>>, vector<128x128xf32>
    %cst_62 = arith.constant dense<0.000000e+00> : vector<2x128xf32>
    %247 = tpu.matmul %245, %246, %cst_62 {dimension_numbers = #tpu.dot_dimension_numbers<[1], [0], [0], [1], [0, 0, 1, 1], [], []>} : vector<2x128xf32>, vector<128x128xf32>, vector<2x128xf32> -> vector<2x128xf32>
    %c0_63 = arith.constant 0 : index
    %c0_64 = arith.constant 0 : index
    %248 = vector.load %arg7[%c0_63, %c0_64] : memref<1x128xf32, #tpu.memory_space<vmem>>, vector<1x128xf32>
    %249 = vector.broadcast %248 : vector<1x128xf32> to vector<2x128xf32>
    %250 = arith.addf %247, %249 : vector<2x128xf32>
    %251 = math.tanh %250 : vector<2x128xf32>
    %c0_65 = arith.constant 0 : index
    %c0_66 = arith.constant 0 : index
    %252 = vector.load %arg8[%c0_65, %c0_66] : memref<128x1xf32, #tpu.memory_space<vmem>>, vector<128x1xf32>
    %cst_67 = arith.constant dense<0.000000e+00> : vector<2x1xf32>
    %253 = tpu.matmul %251, %252, %cst_67 {dimension_numbers = #tpu.dot_dimension_numbers<[1], [0], [0], [1], [0, 0, 1, 1], [], []>} : vector<2x128xf32>, vector<128x1xf32>, vector<2x1xf32> -> vector<2x1xf32>
    %c0_68 = arith.constant 0 : index
    %c0_69 = arith.constant 0 : index
    %254 = vector.load %arg9[%c0_68, %c0_69] : memref<1x1xf32, #tpu.memory_space<vmem>>, vector<1x1xf32>
    %255 = vector.broadcast %254 : vector<1x1xf32> to vector<2x1xf32>
    %256 = arith.addf %253, %255 : vector<2x1xf32>
    %c0_70 = arith.constant 0 : index
    %c0_71 = arith.constant 0 : index
    %257 = vector.load %arg10[%c0_70, %c0_71] : memref<2x1xf32, #tpu.memory_space<vmem>>, vector<2x1xf32>
    tpu.vector_store %arg10[%c0_70, %c0_71], %256 {strides = array<i32>} : memref<2x1xf32, #tpu.memory_space<vmem>>, vector<2x1xf32>,
    return
  }
}

</mosaic_0001>

<bundles_post_ra>
// kernel: tpu_custom_call.1
= control target key start
LH: loop header
LB: loop body
LE: loop exit
PB: predicated region body
PF: predicated region fallthrough
CT: control target
= control target key end

     0   :  { %s3711_s0 = inlined_call_operand.vmem [shape: f32[16,8], index: 0, kind: input, shape index: {}]   ;;  %s3712_s1 = inlined_call_operand.vmem [shape: f32[8,512], index: 1, kind: input, shape index: {}]   ;;  %s3713_s2 = inlined_call_operand.hbm [shape: f32[128,512], index: 2, kind: input, shape index: {}]   ;;  %s3714_s3 = inlined_call_operand.vmem [shape: f32[1,512], index: 3, kind: input, shape index: {}]   ;;  %s3715_s4 = inlined_call_operand.vmem [shape: f32[128,128], index: 4, kind: input, shape index: {}]   ;;  %s3716_s5 = inlined_call_operand.vmem [shape: f32[1,128], index: 5, kind: input, shape index: {}]   ;;  %s3717_s6 = inlined_call_operand.hbm [shape: f32[128,128], index: 6, kind: input, shape index: {}]   ;;  %s3718_s7 = inlined_call_operand.vmem [shape: f32[1,128], index: 7, kind: input, shape index: {}]   ;;  %s3719_s8 = inlined_call_operand.vmem [shape: f32[128,1], index: 8, kind: input, shape index: {}]   ;;  %s3720_s9 = inlined_call_operand.<no memory space> [shape: f32[1,1], index: 9, kind: input, shape index: {}]   ;;  %s3721_s10 = inlined_call_operand.vmem [shape: f32[2,1], index: 10, kind: output, shape index: {}]  }
   0x1   :  { %v15_v0 = vstv %s3720_s9 }
   0x2   :  { %16 = vst [vmem:[#allocation2] sm:$0x1] %v15_v0 }
   0x3   :  { %17 = vsyncpa [#allocation4], 0 }
   0x4   :  { %18 = vsyncpa [#allocation6], 0  ;;  %s3038_s15 = smov [#allocation3]   ;;  %s2990_s19 = scalar_lea.hbm %s3713_s2, 8192 }
   0x5   :  { %s28_s16 = sshll.u32 %s3038_s15, 4  ;;  %p2991_p0 = scmp.ne.s32.totalorder %s3713_s2, %s2990_s19  ;;  %s29_s16 = int_to_ptr.vmem [resolvable:$true] %s28_s16 }
   0x6   :  { %p2994_p1 = scmp.lt.u32.totalorder %s2990_s19, %s3713_s2 }
   0x8   :  { %p2996_p2 = pnand %p2994_p1, %p2991_p0 }
   0xa   :  { %2999 = shalt.err (!%p2996_p2)
}
   0xb   :  { %s3000_s9 = scalar_lea.vmem %s29_s16, 8192  ;;  %p3005_p4 = scmp.lt.s32.totalorder %s29_s16, %s29_s16 }
   0xc   :  { %p3001_p3 = scmp.ne.s32.totalorder %s29_s16, %s3000_s9  ;;  %p3006_p5 = scmp.lt.s32.totalorder %s3000_s9, %s3000_s9 }
   0xe   :  { %p3007_p6 = por %p3006_p5, %p3005_p4 }
  0x10   :  { %p3008_p7 = pnand %p3007_p6, %p3001_p3 }
  0x12   :  { %3011 = shalt.err (!%p3008_p7)
}
  0x13   :  { %s3039_s24 = smov 512   ;;  %s3040_s25 = smov 32  }
  0x14   :  { %34 = dma.hbm_to_vmem [thread:$0]  %s3713_s2, 8192, %s29_s16, [#allocation4], %s3039_s24, %s3039_s24, %s3040_s25  }
  0x15   :  { %s3041_s28 = smov [#allocation5]   ;;  %s3012_s12 = scalar_lea.hbm %s3717_s6, 2048 }
  0x16   :  { %s46_s29 = sshll.u32 %s3041_s28, 4  ;;  %p3013_p8 = scmp.ne.s32.totalorder %s3717_s6, %s3012_s12  ;;  %s47_s29 = int_to_ptr.vmem [resolvable:$true] %s46_s29 }
  0x17   :  { %p3016_p9 = scmp.lt.u32.totalorder %s3012_s12, %s3717_s6 }
  0x19   :  { %p3018_p10 = pnand %p3016_p9, %p3013_p8 }
  0x1b   :  { %3021 = shalt.err (!%p3018_p10)
}
  0x1c   :  { %s3022_s18 = scalar_lea.vmem %s47_s29, 2048  ;;  %p3027_p12 = scmp.lt.s32.totalorder %s47_s29, %s47_s29 }
  0x1d   :  { %p3023_p11 = scmp.ne.s32.totalorder %s47_s29, %s3022_s18  ;;  %p3028_p13 = scmp.lt.s32.totalorder %s3022_s18, %s3022_s18 }
  0x1f   :  { %p3029_p0 = por %p3028_p13, %p3027_p12 }
  0x21   :  { %p3030_p1 = pnand %p3029_p0, %p3023_p11 }
  0x23   :  { %3033 = shalt.err (!%p3030_p1)
}
  0x24   :  { %s3042_s2 = smov 128   ;;  %s3043_s16 = smov 8  }
  0x25   :  { %52 = dma.hbm_to_vmem [thread:$0]  %s3717_s6, 2048, %s47_s29, [#allocation6], %s3042_s2, %s3042_s2, %s3043_s16  }
  0x26   :  { %3034 = dma.done.wait [#allocation4], 8192  }
  0x27   :  { %3035 = vsyncadd [#allocation4], 4294959104 }
  0x28   :  { %3036 = dma.done.wait [#allocation6], 2048  }
  0x29   :  { %3037 = vsyncadd [#allocation6], 4294965248  ;;  %v3044_v1 = vmov 0.0   ;;  %v68_v2 = vld [vmem:[%s3712_s1 + $0x8] sm:$0xff]  ;;  %v67_v3 = vld [vmem:[%s3712_s1] sm:$0xff]  ;;  %vm93_vm0 = vcmask 64512  }
  0x2a   :  { %164 = vmatprep.mubr.f32.mxu1 %v3044_v1  ;;  %382 = vmatprep.mubr.f32.mxu0 %v3044_v1  ;;  %v65_v4 = vld [vmem:[%s3711_s0] sm:$0xff]  ;;  %v255_v5 = vld [vmem:[#allocation3 + $0x8] sm:$0xff]  ;;  %v70_v14 = vld [vmem:[%s3712_s1 + $0x18] sm:$0xff]  ;;  %vm3046_vm1 = vmmov 0   ;;  %vm2070_vm2 = vcmask 1024  }
  0x2b   :  { %100 = vmatprep.subr.mxu1 %v68_v2  ;;  %v259_v6 = vld [vmem:[#allocation3 + $0x28] sm:$0xff]  ;;  %v254_v7 = vld [vmem:[#allocation3] sm:$0xff]  ;;  %v257_v19 = vld [vmem:[#allocation3 + $0x18] sm:$0xff] }
  0x2c   :  { %101 = vmatpush1.msra.mxu1 %v67_v3  ;;  %v3140_v8 = vpack.c.bf16 %v259_v6, %v255_v5  ;;  %v258_v9 = vld [vmem:[#allocation3 + $0x20] sm:$0xff]  ;;  %v263_v11 = vld [vmem:[#allocation3 + $0x48] sm:$0xff]  ;;  %v261_v21 = vld [vmem:[#allocation3 + $0x38] sm:$0xff] }
  0x2d   :  { %v3145_v10 = vld [vmem:[%s3711_s0 + $0x8] sm:$0xff]  ;;  %2078 = vmatmul.mubr.msk.f32.vlgmr.msra.gmra.mrb[0].mxu1 %vm93_vm0, %v65_v4  ;;  %v3148_v12 = vpack.c.bf16 %v258_v9, %v254_v7  ;;  %v69_v18 = vld [vmem:[%s3712_s1 + $0x10] sm:$0xff]  ;;  %177 = vmatprep.subr.mxu1 %v70_v14  ;;  %v3164_v24 = vpack.c.bf16 %v261_v21, %v257_v19  ;;  %v265_v30 = vld [vmem:[#allocation3 + $0x58] sm:$0xff] }
  0x2e   :  { %v267_v13 = vld [vmem:[#allocation3 + $0x68] sm:$0xff]  ;;  %v262_v15 = vld [vmem:[#allocation3 + $0x40] sm:$0xff]  ;;  %2266 = vmatprep.subr.bf16.mxu0 %v3140_v8  ;;  %170 = vmatprep.mubr.f32.mxu1 %v3044_v1  ;;  %v256_v26 = vld [vmem:[#allocation3 + $0x10] sm:$0xff] }
  0x2f   :  { %v3155_v16 = vpack.c.bf16 %v267_v13, %v263_v11  ;;  %v266_v17 = vld [vmem:[#allocation3 + $0x60] sm:$0xff]  ;;  %2268 = vmatpush1.bf16.msra.mxu0 %v3148_v12  ;;  %v271_v22 = vld [vmem:[#allocation3 + $0x88] sm:$0xff]  ;;  %178 = vmatpush1.msra.mxu1 %v69_v18  ;;  %v260_v27 = vld [vmem:[#allocation3 + $0x30] sm:$0xff] }
  0x30   :  { %v3161_v20 = vpack.c.bf16 %v266_v17, %v262_v15  ;;  %v275_v23 = vld [vmem:[#allocation3 + $0xa8] sm:$0xff]  ;;  %v270_v28 = vld [vmem:[#allocation3 + $0x80] sm:$0xff]  ;;  %v269_v31 = vld [vmem:[#allocation3 + $0x78] sm:$0xff]  ;;  %2298 = vmatprep.subr.bf16.mxu1 %v3164_v24  ;;  %v3172_v32 = vpack.c.bf16 %v260_v27, %v256_v26 }
  0x31   :  { %2270 = vmatprep.subr.bf16.mxu0 %v3155_v16  ;;  %v3166_v25 = vpack.c.bf16 %v275_v23, %v271_v22  ;;  %2079 = vmatmul.mubr.msk.f32.gmra.mrb[2].mxu1 %vm93_vm0, %v3145_v10  ;;  %v274_v29 = vld [vmem:[#allocation3 + $0xa0] sm:$0xff]  ;;  %v279_v33 = vld [vmem:[#allocation3 + $0xc8] sm:$0xff]  ;;  %v3177_v36 = vpack.c.bf16 %v269_v31, %v265_v30  ;;  %v264_v37 = vld [vmem:[#allocation3 + $0x50] sm:$0xff] }
  0x32   :  { %241 = vmatprep.mubr.f32.mxu1 %v3044_v1  ;;  %v283_v34 = vld [vmem:[#allocation3 + $0xe8] sm:$0xff]  ;;  %v3175_v35 = vpack.c.bf16 %v274_v29, %v270_v28  ;;  %v268_v38 = vld [vmem:[#allocation3 + $0x70] sm:$0xff]  ;;  %v278_v39 = vld [vmem:[#allocation3 + $0xc0] sm:$0xff] }
  0x33   :  { %2272 = vmatpush1.bf16.msra.mxu0 %v3161_v20  ;;  %v3180_v40 = vpack.c.bf16 %v283_v34, %v279_v33  ;;  %v282_v41 = vld [vmem:[#allocation3 + $0xe0] sm:$0xff]  ;;  %v273_v42 = vld [vmem:[#allocation3 + $0x98] sm:$0xff]  ;;  %v287_v44 = vld [vmem:[#allocation3 + $0x108] sm:$0xff]  ;;  %v3184_v46 = vpack.c.bf16 %v268_v38, %v264_v37 }
  0x34   :  { %2274 = vmatprep.subr.bf16.mxu0 %v3166_v25  ;;  %v277_v43 = vld [vmem:[#allocation3 + $0xb8] sm:$0xff]  ;;  %v291_v45 = vld [vmem:[#allocation3 + $0x128] sm:$0xff]  ;;  %v3189_v47 = vpack.c.bf16 %v282_v41, %v278_v39  ;;  %v272_v49 = vld [vmem:[#allocation3 + $0x90] sm:$0xff] }
  0x35   :  { %2080 = vmatmul.mubr.msk.f32.vlgmr.msra.gmra.mrb[4].mxu1 %vm93_vm0, %v65_v4  ;;  %v3191_v48 = vpack.c.bf16 %v277_v43, %v273_v42  ;;  %v276_v50 = vld [vmem:[#allocation3 + $0xb0] sm:$0xff]  ;;  %v286_v51 = vld [vmem:[#allocation3 + $0x100] sm:$0xff]  ;;  %v3194_v52 = vpack.c.bf16 %v291_v45, %v287_v44  ;;  %v281_v54 = vld [vmem:[#allocation3 + $0xd8] sm:$0xff] }
  0x36   :  { %2300 = vmatpush1.bf16.msra.mxu1 %v3172_v32  ;;  %247 = vmatprep.mubr.f32.mxu1 %v3044_v1  ;;  %v290_v53 = vld [vmem:[#allocation3 + $0x120] sm:$0xff]  ;;  %v285_v55 = vld [vmem:[#allocation3 + $0xf8] sm:$0xff]  ;;  %v295_v56 = vld [vmem:[#allocation3 + $0x148] sm:$0xff]  ;;  %v3199_v58 = vpack.c.bf16 %v276_v50, %v272_v49 }
  0x37   :  { %2276 = vmatpush1.bf16.msra.mxu0 %v3175_v35  ;;  %2302 = vmatprep.subr.bf16.mxu1 %v3177_v36  ;;  %v299_v57 = vld [vmem:[#allocation3 + $0x168] sm:$0xff]  ;;  %v3204_v59 = vpack.c.bf16 %v290_v53, %v286_v51  ;;  %v3206_v60 = vpack.c.bf16 %v285_v55, %v281_v54  ;;  %v280_v61 = vld [vmem:[#allocation3 + $0xd0] sm:$0xff]  ;;  %v294_v63 = vld [vmem:[#allocation3 + $0x140] sm:$0xff]  ;;  %v73_v55 = vlaneseq }
  0x38   :  { %2278 = vmatprep.subr.bf16.mxu0 %v3180_v40  ;;  %v284_v62 = vld [vmem:[#allocation3 + $0xf0] sm:$0xff]  ;;  %v3209_v0 = vpack.c.bf16 %v299_v57, %v295_v56  ;;  %v298_v2 = vld [vmem:[#allocation3 + $0x160] sm:$0xff]  ;;  %v289_v3 = vld [vmem:[#allocation3 + $0x118] sm:$0xff] }
  0x39   :  { %2081 = vmatmul.mubr.msk.f32.gmra.mrb[6].mxu1 %vm93_vm0, %v3145_v10  ;;  %v293_v4 = vld [vmem:[#allocation3 + $0x138] sm:$0xff]  ;;  %v303_v5 = vld [vmem:[#allocation3 + $0x188] sm:$0xff]  ;;  %v3212_v7 = vpack.c.bf16 %v284_v62, %v280_v61  ;;  %v3216_v9 = vpack.c.bf16 %v298_v2, %v294_v63  ;;  %v288_v11 = vld [vmem:[#allocation3 + $0x110] sm:$0xff]  ;;  %v74_v56 = vshrl.u32 %v73_v55, 7 }
  0x3a   :  { %2304 = vmatpush1.bf16.msra.mxu1 %v3184_v46  ;;  %453 = vmatprep.mubr.f32.mxu1 %v3044_v1  ;;  %v307_v6 = vld [vmem:[#allocation3 + $0x1a8] sm:$0xff]  ;;  %v3218_v10 = vpack.c.bf16 %v293_v4, %v289_v3  ;;  %v292_v13 = vld [vmem:[#allocation3 + $0x130] sm:$0xff]  ;;  %v302_v14 = vld [vmem:[#allocation3 + $0x180] sm:$0xff] }
  0x3b   :  { %2280 = vmatpush1.bf16.msra.mxu0 %v3189_v47  ;;  %2306 = vmatprep.subr.bf16.mxu1 %v3191_v48  ;;  %v3221_v15 = vpack.c.bf16 %v307_v6, %v303_v5  ;;  %v306_v17 = vld [vmem:[#allocation3 + $0x1a0] sm:$0xff]  ;;  %v297_v18 = vld [vmem:[#allocation3 + $0x158] sm:$0xff]  ;;  %v311_v21 = vld [vmem:[#allocation3 + $0x1c8] sm:$0xff]  ;;  %v3224_v23 = vpack.c.bf16 %v292_v13, %v288_v11  ;;  %v75_v57 = vsub.s32 0, %v74_v56  ;;  %v79_v63 = vsub.s32 1, %v74_v56 }
  0x3c   :  { %2282 = vmatprep.subr.bf16.mxu0 %v3194_v52  ;;  %v301_v19 = vld [vmem:[#allocation3 + $0x178] sm:$0xff]  ;;  %v315_v22 = vld [vmem:[#allocation3 + $0x1e8] sm:$0xff]  ;;  %v3228_v26 = vpack.c.bf16 %v306_v17, %v302_v14  ;;  %v296_v28 = vld [vmem:[#allocation3 + $0x150] sm:$0xff]  ;;  %v83_v14 = vsub.s32 2, %v74_v56 }
  0x3d   :  { %v3230_v27 = vpack.c.bf16 %v301_v19, %v297_v18  ;;  %v300_v29 = vld [vmem:[#allocation3 + $0x170] sm:$0xff]  ;;  %v310_v30 = vld [vmem:[#allocation3 + $0x1c0] sm:$0xff]  ;;  %v3233_v31 = vpack.c.bf16 %v315_v22, %v311_v21  ;;  %v305_v34 = vld [vmem:[#allocation3 + $0x198] sm:$0xff]  ;;  %v87_v18 = vsub.s32 3, %v74_v56 }
  0x3e   :  { %2308 = vmatpush1.bf16.msra.mxu1 %v3199_v58  ;;  %v314_v33 = vld [vmem:[#allocation3 + $0x1e0] sm:$0xff]  ;;  %v309_v37 = vld [vmem:[#allocation3 + $0x1b8] sm:$0xff]  ;;  %v3236_v38 = vpack.c.bf16 %v300_v29, %v296_v28  ;;  %v304_v42 = vld [vmem:[#allocation3 + $0x190] sm:$0xff] }
  0x3f   :  { %2284 = vmatpush1.bf16.msra.mxu0 %v3204_v59  ;;  %2310 = vmatprep.subr.bf16.mxu1 %v3206_v60  ;;  %v3240_v39 = vpack.c.bf16 %v314_v33, %v310_v30  ;;  %v3242_v41 = vpack.c.bf16 %v309_v37, %v305_v34  ;;  %v308_v43 = vld [vmem:[#allocation3 + $0x1b0] sm:$0xff]  ;;  %v313_v44 = vld [vmem:[#allocation3 + $0x1d8] sm:$0xff] }
  0x40   :  { %2286 = vmatprep.subr.bf16.mxu0 %v3209_v0  ;;  %v317_v45 = vld [vmem:[#allocation3 + $0x1f8] sm:$0xff]  ;;  %v3246_v49 = vpack.c.bf16 %v308_v43, %v304_v42  ;;  %v312_v51 = vld [vmem:[#allocation3 + $0x1d0] sm:$0xff] }
  0x41   :  { %v3250_v50 = vpack.c.bf16 %v317_v45, %v313_v44  ;;  %v316_v53 = vld [vmem:[#allocation3 + $0x1f0] sm:$0xff]  ;;  %v71_v61 = vld [vmem:[%s3714_s3] sm:$0xf] }
  0x42   :  { %2312 = vmatpush1.bf16.msra.mxu1 %v3212_v7  ;;  %v3255_v54 = vpack.c.bf16 %v316_v53, %v312_v51  ;;  %v76_v3 = vrot.slane %v71_v61, %v75_v57  ;;  %v80_v4 = vrot.slane %v71_v61, %v79_v63  ;;  %v84_v21 = vrot.slane %v71_v61, %v83_v14 }
  0x43   :  { %2288 = vmatpush1.bf16.msra.mxu0 %v3216_v9  ;;  %2314 = vmatprep.subr.bf16.mxu1 %v3218_v10  ;;  %v88_v22 = vrot.slane %v71_v61, %v87_v18 }
  0x44   :  { %2290 = vmatprep.subr.bf16.mxu0 %v3221_v15 }
  0x46   :  { %2316 = vmatpush1.bf16.msra.mxu1 %v3224_v23 }
  0x47   :  { %2292 = vmatpush1.bf16.msra.mxu0 %v3228_v26  ;;  %2318 = vmatprep.subr.bf16.mxu1 %v3230_v27 }
  0x48   :  { %2294 = vmatprep.subr.bf16.mxu0 %v3233_v31 }
  0x4a   :  { %2320 = vmatpush1.bf16.msra.mxu1 %v3236_v38 }
  0x4b   :  { %2296 = vmatpush1.bf16.msra.mxu0 %v3240_v39  ;;  %2322 = vmatprep.subr.bf16.mxu1 %v3242_v41 }
  0x4c   :  { %2330 = vmatprep.subr.bf16.mxu0 %v3140_v8 }
  0x4e   :  { %383 = vmatmul.mubr.f32.vlgmr.msra.gmra.mrb[0].mxu0 %v3044_v1  ;;  %2324 = vmatpush1.bf16.msra.mxu1 %v3246_v49 }
  0x4f   :  { %2326 = vmatprep.subr.bf16.mxu1 %v3250_v50  ;;  %2332 = vmatpush1.bf16.msra.mxu0 %v3148_v12 }
  0x50   :  { %2334 = vmatprep.subr.bf16.mxu0 %v3155_v16  ;;  %552 = vmatprep.mubr.f32.mxu0 %v3044_v1 }
  0x52   :  { %2328 = vmatpush1.bf16.msra.mxu1 %v3255_v54 }
  0x53   :  { %2362 = vmatprep.subr.bf16.mxu1 %v3164_v24  ;;  %2336 = vmatpush1.bf16.msra.mxu0 %v3161_v20 }
  0x54   :  { %2338 = vmatprep.subr.bf16.mxu0 %v3166_v25 }
  0x55   :  { %454 = vmatmul.mubr.f32.vlgmr.msra.gmra.mrb[8].mxu1 %v3044_v1 }
  0x56   :  { %2364 = vmatpush1.bf16.msra.mxu1 %v3172_v32  ;;  %623 = vmatprep.mubr.f32.mxu1 %v3044_v1 }
  0x57   :  { %2366 = vmatprep.subr.bf16.mxu1 %v3177_v36  ;;  %2340 = vmatpush1.bf16.msra.mxu0 %v3175_v35 }
  0x58   :  { %2342 = vmatprep.subr.bf16.mxu0 %v3180_v40 }
  0x5a   :  { %2368 = vmatpush1.bf16.msra.mxu1 %v3184_v46 }
  0x5b   :  { %2370 = vmatprep.subr.bf16.mxu1 %v3191_v48  ;;  %2344 = vmatpush1.bf16.msra.mxu0 %v3189_v47 }
  0x5c   :  { %2346 = vmatprep.subr.bf16.mxu0 %v3194_v52 }
  0x5e   :  { %2372 = vmatpush1.bf16.msra.mxu1 %v3199_v58 }
  0x5f   :  { %2374 = vmatprep.subr.bf16.mxu1 %v3206_v60  ;;  %2348 = vmatpush1.bf16.msra.mxu0 %v3204_v59 }
  0x60   :  { %2350 = vmatprep.subr.bf16.mxu0 %v3209_v0 }
  0x62   :  { %2376 = vmatpush1.bf16.msra.mxu1 %v3212_v7 }
  0x63   :  { %2378 = vmatprep.subr.bf16.mxu1 %v3218_v10  ;;  %2352 = vmatpush1.bf16.msra.mxu0 %v3216_v9 }
  0x64   :  { %2354 = vmatprep.subr.bf16.mxu0 %v3221_v15 }
  0x66   :  { %2380 = vmatpush1.bf16.msra.mxu1 %v3224_v23 }
  0x67   :  { %2382 = vmatprep.subr.bf16.mxu1 %v3230_v27  ;;  %2356 = vmatpush1.bf16.msra.mxu0 %v3228_v26 }
  0x68   :  { %2358 = vmatprep.subr.bf16.mxu0 %v3233_v31 }
  0x6a   :  { %2384 = vmatpush1.bf16.msra.mxu1 %v3236_v38 }
  0x6b   :  { %2386 = vmatprep.subr.bf16.mxu1 %v3242_v41  ;;  %2360 = vmatpush1.bf16.msra.mxu0 %v3240_v39 }
  0x6c   :  { %2394 = vmatprep.subr.bf16.mxu0 %v3140_v8 }
  0x6e   :  { %2388 = vmatpush1.bf16.msra.mxu1 %v3246_v49 }
  0x6f   :  { %2390 = vmatprep.subr.bf16.mxu1 %v3250_v50 }
  0x72   :  { %2392 = vmatpush1.bf16.msra.mxu1 %v3255_v54 }
  0x73   :  { %2426 = vmatprep.subr.bf16.mxu1 %v3164_v24 }
 0x100   :  { %v166_v62 = vpop.f32.mrb[0].mxu1 }
 0x101   :  { %v168_v2 = vpop.f32.mrb[1].mxu1  ;;  %v3306_v34 = vadd.f32 %v166_v62, %v76_v3 }
 0x102   :  { %v3308_v37 = vadd.f32 %v168_v2, %v80_v4 }
 0x104   :  { %v172_v5 = vpop.f32.mrb[2].mxu1 }
 0x105   :  { %v3298_v6 = vadd.f32 %v172_v5, %v76_v3  ;;  %v174_v11 = vpop.f32.mrb[3].mxu1 }
 0x106   :  { %v3300_v13 = vadd.f32 %v174_v11, %v80_v4 }
 0x108   :  { %v243_v17 = vpop.f32.mrb[4].mxu1 }
 0x109   :  { %v245_v19 = vpop.f32.mrb[5].mxu1  ;;  %v3315_v62 = vadd.f32 %v243_v17, %v84_v21 }
 0x10a   :  { %v3312_v55 = vadd.f32 %v245_v19, %v88_v22 }
 0x10c   :  { %v249_v28 = vpop.f32.mrb[6].mxu1 }
 0x10d   :  { %v3302_v29 = vadd.f32 %v249_v28, %v84_v21  ;;  %v251_v30 = vpop.f32.mrb[7].mxu1 }
 0x10e   :  { %v3304_v33 = vadd.f32 %v251_v30, %v88_v22 }
 0x121   :  { %v384_v42 = vpop.f32.mrb[0].mxu0 }
 0x122   :  { %v460_v43 = vadd.f32 %v384_v42, %v3306_v34  ;;  %v386_v44 = vpop.f32.mrb[1].mxu0 }
 0x123   :  { %v461_v45 = vadd.f32 %v386_v44, %v3308_v37 }
 0x124   :  { %v2082_v51 = vmul.f32 -1.442695, %v460_v43 }
 0x125   :  { %v2083_v53 = vmul.f32 -1.442695, %v461_v45 }
 0x126   :  { %2858 = vpow2.f32 %v2082_v51 }
 0x127   :  { %2860 = vpow2.f32 %v2083_v53 }
 0x128   :  { %v455_v56 = vpop.f32.mrb[8].mxu1 }
 0x129   :  { %v457_v57 = vpop.f32.mrb[9].mxu1  ;;  %v462_v2 = vadd.f32 %v455_v56, %v3315_v62 }
 0x12a   :  { %v463_v61 = vadd.f32 %v457_v57, %v3312_v55 }
 0x12c   :  { %v2084_v63 = vmul.f32 -1.442695, %v463_v61 }
 0x12e   :  { %2862 = vpow2.f32 %v2084_v63 }
 0x12f   :  { %2864 = vtanh.f32 %v462_v2 }
 0x130   :  { %v2859_v3 = vpop.eup %2858 }
 0x131   :  { %v2861_v4 = vpop.eup %2860  ;;  %v467_v5 = vadd.f32 1.0, %v2859_v3 }
 0x132   :  { %v473_v11 = vadd.f32 1.0, %v2861_v4 }
 0x133   :  { %2866 = vrcp.f32 %v467_v5 }
 0x134   :  { %2868 = vrcp.f32 %v473_v11 }
 0x138   :  { %v2863_v14 = vpop.eup %2862 }
 0x139   :  { %v2865_v18 = vpop.eup %2864  ;;  %v480_v30 = vadd.f32 1.0, %v2863_v14 }
 0x13b   :  { %2870 = vrcp.f32 %v480_v30 }
 0x13d   :  { %v2867_v19 = vpop.eup %2866 }
 0x13e   :  { %v2869_v22 = vpop.eup %2868  ;;  %v484_v28 = vmul.f32 %v2867_v19, %v2865_v18 }
 0x13f   :  { %v483_v42 = vmul.f32 0.0, %v2869_v22 }
 0x141   :  { %v3318_v17 = vadd.f32 %v484_v28, %v483_v42 }
 0x143   :  { %2872 = vtanh.f32 %v3318_v17 }
 0x145   :  { %v2871_v21 = vpop.eup %2870 }
 0x14d   :  { %v2873_v43 = vpop.eup %2872 }
 0x14e   :  { %v487_v44 = vmul.f32 %v2873_v43, %v2871_v21 }
 0x150   :  { %553 = vmatmul.mubr.f32.vlgmr.msra.gmra.mrb[2].mxu0 %v487_v44  ;;  %624 = vmatmul.mubr.f32.vlgmr.msra.gmra.mrb[10].mxu1 %v487_v44 }
 0x151   :  { %2396 = vmatpush1.bf16.msra.mxu0 %v3148_v12  ;;  %2428 = vmatpush1.bf16.msra.mxu1 %v3172_v32 }
 0x152   :  { %2398 = vmatprep.subr.bf16.mxu0 %v3155_v16  ;;  %2430 = vmatprep.subr.bf16.mxu1 %v3177_v36 }
 0x153   :  { %740 = vmatprep.mubr.f32.mxu0 %v3044_v1  ;;  %811 = vmatprep.mubr.f32.mxu1 %v3044_v1 }
 0x155   :  { %2400 = vmatpush1.bf16.msra.mxu0 %v3161_v20  ;;  %2432 = vmatpush1.bf16.msra.mxu1 %v3184_v46 }
 0x156   :  { %2402 = vmatprep.subr.bf16.mxu0 %v3166_v25  ;;  %2434 = vmatprep.subr.bf16.mxu1 %v3191_v48 }
 0x159   :  { %2404 = vmatpush1.bf16.msra.mxu0 %v3175_v35  ;;  %2436 = vmatpush1.bf16.msra.mxu1 %v3199_v58 }
 0x15a   :  { %2406 = vmatprep.subr.bf16.mxu0 %v3180_v40  ;;  %2438 = vmatprep.subr.bf16.mxu1 %v3206_v60 }
 0x15d   :  { %2408 = vmatpush1.bf16.msra.mxu0 %v3189_v47  ;;  %2440 = vmatpush1.bf16.msra.mxu1 %v3212_v7 }
 0x15e   :  { %2410 = vmatprep.subr.bf16.mxu0 %v3194_v52  ;;  %2442 = vmatprep.subr.bf16.mxu1 %v3218_v10 }
 0x161   :  { %2412 = vmatpush1.bf16.msra.mxu0 %v3204_v59  ;;  %2444 = vmatpush1.bf16.msra.mxu1 %v3224_v23 }
 0x162   :  { %2414 = vmatprep.subr.bf16.mxu0 %v3209_v0  ;;  %2446 = vmatprep.subr.bf16.mxu1 %v3230_v27 }
 0x165   :  { %2416 = vmatpush1.bf16.msra.mxu0 %v3216_v9  ;;  %2448 = vmatpush1.bf16.msra.mxu1 %v3236_v38 }
 0x166   :  { %2418 = vmatprep.subr.bf16.mxu0 %v3221_v15  ;;  %2450 = vmatprep.subr.bf16.mxu1 %v3242_v41 }
 0x169   :  { %2420 = vmatpush1.bf16.msra.mxu0 %v3228_v26  ;;  %2452 = vmatpush1.bf16.msra.mxu1 %v3246_v49 }
 0x16a   :  { %2422 = vmatprep.subr.bf16.mxu0 %v3233_v31  ;;  %2454 = vmatprep.subr.bf16.mxu1 %v3250_v50 }
 0x16d   :  { %2424 = vmatpush1.bf16.msra.mxu0 %v3240_v39  ;;  %2456 = vmatpush1.bf16.msra.mxu1 %v3255_v54 }
 0x16e   :  { %2458 = vmatprep.subr.bf16.mxu0 %v3140_v8  ;;  %2490 = vmatprep.subr.bf16.mxu1 %v3164_v24 }
 0x223   :  { %v554_v45 = vpop.f32.mrb[2].mxu0  ;;  %v625_v51 = vpop.f32.mrb[10].mxu1 }
 0x224   :  { %v634_v53 = vrot.slane %v554_v45, 6  ;;  %v556_v56 = vpop.f32.mrb[3].mxu0  ;;  %v627_v57 = vpop.f32.mrb[11].mxu1  ;;  %v636_v14 = vrot.slane %v625_v51, 6  ;;  %v666_v45 = vrot.slane %v3318_v17, 6 }
 0x225   :  { %v635_v61 = vrot.slane %v556_v56, 6  ;;  %v637_v5 = vrot.slane %v627_v57, 6 }
 0x226   :  { %v642_v63 = vadd.f32 %v634_v53, %v3306_v34  ;;  %v644_v19 = vadd.f32 %v636_v14, %v3315_v62 }
 0x227   :  { %v643_v2 = vadd.f32 %v635_v61, %v3308_v37  ;;  %v645_v11 = vadd.f32 %v637_v5, %v3312_v55 }
 0x228   :  { %v2085_v3 = vmul.f32 -1.442695, %v642_v63 }
 0x229   :  { %v2086_v4 = vmul.f32 -1.442695, %v643_v2  ;;  %v2087_v18 = vmul.f32 -1.442695, %v645_v11 }
 0x22a   :  { %2874 = vpow2.f32 %v2085_v3 }
 0x22b   :  { %2876 = vpow2.f32 %v2086_v4 }
 0x22c   :  { %2878 = vpow2.f32 %v2087_v18 }
 0x22d   :  { %2880 = vtanh.f32 %v644_v19 }
 0x234   :  { %v2875_v22 = vpop.eup %2874 }
 0x235   :  { %v2877_v28 = vpop.eup %2876  ;;  %v649_v30 = vadd.f32 1.0, %v2875_v22 }
 0x236   :  { %v655_v42 = vadd.f32 1.0, %v2877_v28  ;;  %v2879_v21 = vpop.eup %2878 }
 0x237   :  { %2882 = vrcp.f32 %v649_v30  ;;  %v2881_v43 = vpop.eup %2880  ;;  %v662_v57 = vadd.f32 1.0, %v2879_v21 }
 0x238   :  { %2884 = vrcp.f32 %v655_v42 }
 0x239   :  { %2886 = vrcp.f32 %v662_v57 }
 0x241   :  { %v2883_v44 = vpop.eup %2882 }
 0x242   :  { %v2885_v53 = vpop.eup %2884  ;;  %v669_v56 = vmul.f32 %v2883_v44, %v2881_v43 }
 0x243   :  { %v668_v51 = vmul.f32 %v2885_v53, %v666_v45  ;;  %v2887_v63 = vpop.eup %2886 }
 0x245   :  { %v3360_v61 = vadd.f32 %v669_v56, %v668_v51 }
 0x247   :  { %2888 = vtanh.f32 %v3360_v61 }
 0x251   :  { %v2889_v2 = vpop.eup %2888 }
 0x252   :  { %v672_v3 = vmul.f32 %v2889_v2, %v2887_v63 }
 0x254   :  { %v674_v4 = vrot.slane %v672_v3, 2 }
 0x256   :  { %741 = vmatmul.mubr.f32.vlgmr.msra.gmra.mrb[4].mxu0 %v674_v4  ;;  %812 = vmatmul.mubr.f32.vlgmr.msra.gmra.mrb[12].mxu1 %v674_v4 }
 0x257   :  { %2460 = vmatpush1.bf16.msra.mxu0 %v3148_v12  ;;  %2492 = vmatpush1.bf16.msra.mxu1 %v3172_v32 }
 0x258   :  { %2462 = vmatprep.subr.bf16.mxu0 %v3155_v16  ;;  %2494 = vmatprep.subr.bf16.mxu1 %v3177_v36 }
 0x259   :  { %928 = vmatprep.mubr.f32.mxu0 %v3044_v1  ;;  %999 = vmatprep.mubr.f32.mxu1 %v3044_v1 }
 0x25b   :  { %2464 = vmatpush1.bf16.msra.mxu0 %v3161_v20  ;;  %2496 = vmatpush1.bf16.msra.mxu1 %v3184_v46 }
 0x25c   :  { %2466 = vmatprep.subr.bf16.mxu0 %v3166_v25  ;;  %2498 = vmatprep.subr.bf16.mxu1 %v3191_v48 }
 0x25f   :  { %2468 = vmatpush1.bf16.msra.mxu0 %v3175_v35  ;;  %2500 = vmatpush1.bf16.msra.mxu1 %v3199_v58 }
 0x260   :  { %2470 = vmatprep.subr.bf16.mxu0 %v3180_v40  ;;  %2502 = vmatprep.subr.bf16.mxu1 %v3206_v60 }
 0x263   :  { %2472 = vmatpush1.bf16.msra.mxu0 %v3189_v47  ;;  %2504 = vmatpush1.bf16.msra.mxu1 %v3212_v7 }
 0x264   :  { %2474 = vmatprep.subr.bf16.mxu0 %v3194_v52  ;;  %2506 = vmatprep.subr.bf16.mxu1 %v3218_v10 }
 0x267   :  { %2476 = vmatpush1.bf16.msra.mxu0 %v3204_v59  ;;  %2508 = vmatpush1.bf16.msra.mxu1 %v3224_v23 }
 0x268   :  { %2478 = vmatprep.subr.bf16.mxu0 %v3209_v0  ;;  %2510 = vmatprep.subr.bf16.mxu1 %v3230_v27 }
 0x26b   :  { %2480 = vmatpush1.bf16.msra.mxu0 %v3216_v9  ;;  %2512 = vmatpush1.bf16.msra.mxu1 %v3236_v38 }
 0x26c   :  { %2482 = vmatprep.subr.bf16.mxu0 %v3221_v15  ;;  %2514 = vmatprep.subr.bf16.mxu1 %v3242_v41 }
 0x26f   :  { %2484 = vmatpush1.bf16.msra.mxu0 %v3228_v26  ;;  %2516 = vmatpush1.bf16.msra.mxu1 %v3246_v49 }
 0x270   :  { %2486 = vmatprep.subr.bf16.mxu0 %v3233_v31  ;;  %2518 = vmatprep.subr.bf16.mxu1 %v3250_v50 }
 0x273   :  { %2488 = vmatpush1.bf16.msra.mxu0 %v3240_v39  ;;  %2520 = vmatpush1.bf16.msra.mxu1 %v3255_v54 }
 0x274   :  { %2522 = vmatprep.subr.bf16.mxu0 %v3140_v8  ;;  %2554 = vmatprep.subr.bf16.mxu1 %v3164_v24 }
 0x329   :  { %v742_v17 = vpop.f32.mrb[4].mxu0  ;;  %v813_v5 = vpop.f32.mrb[12].mxu1 }
 0x32a   :  { %v822_v11 = vrot.slane %v742_v17, 4  ;;  %v744_v14 = vpop.f32.mrb[5].mxu0  ;;  %v815_v18 = vpop.f32.mrb[13].mxu1  ;;  %v824_v44 = vrot.slane %v813_v5, 4  ;;  %v854_v17 = vrot.slane %v3360_v61, 6 }
 0x32b   :  { %v823_v19 = vrot.slane %v744_v14, 4  ;;  %v825_v21 = vrot.slane %v815_v18, 4 }
 0x32c   :  { %v830_v22 = vadd.f32 %v822_v11, %v3306_v34  ;;  %v832_v53 = vadd.f32 %v824_v44, %v3315_v62 }
 0x32d   :  { %v831_v28 = vadd.f32 %v823_v19, %v3308_v37  ;;  %v833_v43 = vadd.f32 %v825_v21, %v3312_v55 }
 0x32e   :  { %v2088_v30 = vmul.f32 -1.442695, %v830_v22 }
 0x32f   :  { %v2089_v42 = vmul.f32 -1.442695, %v831_v28  ;;  %v2090_v45 = vmul.f32 -1.442695, %v833_v43 }
 0x330   :  { %2890 = vpow2.f32 %v2088_v30 }
 0x331   :  { %2892 = vpow2.f32 %v2089_v42 }
 0x332   :  { %2894 = vpow2.f32 %v2090_v45 }
 0x333   :  { %2896 = vtanh.f32 %v832_v53 }
 0x33a   :  { %v2891_v56 = vpop.eup %2890 }
 0x33b   :  { %v2893_v57 = vpop.eup %2892  ;;  %v837_v51 = vadd.f32 1.0, %v2891_v56 }
 0x33c   :  { %v843_v63 = vadd.f32 1.0, %v2893_v57  ;;  %v2895_v2 = vpop.eup %2894 }
 0x33d   :  { %2898 = vrcp.f32 %v837_v51  ;;  %v2897_v3 = vpop.eup %2896  ;;  %v850_v18 = vadd.f32 1.0, %v2895_v2 }
 0x33e   :  { %2900 = vrcp.f32 %v843_v63 }
 0x33f   :  { %2902 = vrcp.f32 %v850_v18 }
 0x347   :  { %v2899_v4 = vpop.eup %2898 }
 0x348   :  { %v2901_v11 = vpop.eup %2900  ;;  %v857_v14 = vmul.f32 %v2899_v4, %v2897_v3 }
 0x349   :  { %v856_v5 = vmul.f32 %v2901_v11, %v854_v17  ;;  %v2903_v22 = vpop.eup %2902 }
 0x34b   :  { %v3402_v19 = vadd.f32 %v857_v14, %v856_v5 }
 0x34d   :  { %2904 = vtanh.f32 %v3402_v19 }
 0x357   :  { %v2905_v28 = vpop.eup %2904 }
 0x358   :  { %v860_v30 = vmul.f32 %v2905_v28, %v2903_v22 }
 0x35a   :  { %v862_v42 = vrot.slane %v860_v30, 4  ;;  %v1042_v30 = vrot.slane %v3402_v19, 6 }
 0x35c   :  { %929 = vmatmul.mubr.f32.vlgmr.msra.gmra.mrb[6].mxu0 %v862_v42  ;;  %1000 = vmatmul.mubr.f32.vlgmr.msra.gmra.mrb[14].mxu1 %v862_v42 }
 0x35d   :  { %2524 = vmatpush1.bf16.msra.mxu0 %v3148_v12  ;;  %2556 = vmatpush1.bf16.msra.mxu1 %v3172_v32 }
 0x35e   :  { %2526 = vmatprep.subr.bf16.mxu0 %v3155_v16  ;;  %2558 = vmatprep.subr.bf16.mxu1 %v3177_v36 }
 0x35f   :  { %1116 = vmatprep.mubr.f32.mxu0 %v3044_v1  ;;  %1187 = vmatprep.mubr.f32.mxu1 %v3044_v1 }
 0x361   :  { %2528 = vmatpush1.bf16.msra.mxu0 %v3161_v20  ;;  %2560 = vmatpush1.bf16.msra.mxu1 %v3184_v46 }
 0x362   :  { %2530 = vmatprep.subr.bf16.mxu0 %v3166_v25  ;;  %2562 = vmatprep.subr.bf16.mxu1 %v3191_v48 }
 0x365   :  { %2532 = vmatpush1.bf16.msra.mxu0 %v3175_v35  ;;  %2564 = vmatpush1.bf16.msra.mxu1 %v3199_v58 }
 0x366   :  { %2534 = vmatprep.subr.bf16.mxu0 %v3180_v40  ;;  %2566 = vmatprep.subr.bf16.mxu1 %v3206_v60 }
 0x369   :  { %2536 = vmatpush1.bf16.msra.mxu0 %v3189_v47  ;;  %2568 = vmatpush1.bf16.msra.mxu1 %v3212_v7 }
 0x36a   :  { %2538 = vmatprep.subr.bf16.mxu0 %v3194_v52  ;;  %2570 = vmatprep.subr.bf16.mxu1 %v3218_v10 }
 0x36d   :  { %2540 = vmatpush1.bf16.msra.mxu0 %v3204_v59  ;;  %2572 = vmatpush1.bf16.msra.mxu1 %v3224_v23 }
 0x36e   :  { %2542 = vmatprep.subr.bf16.mxu0 %v3209_v0  ;;  %2574 = vmatprep.subr.bf16.mxu1 %v3230_v27 }
 0x371   :  { %2544 = vmatpush1.bf16.msra.mxu0 %v3216_v9  ;;  %2576 = vmatpush1.bf16.msra.mxu1 %v3236_v38 }
 0x372   :  { %2546 = vmatprep.subr.bf16.mxu0 %v3221_v15  ;;  %2578 = vmatprep.subr.bf16.mxu1 %v3242_v41 }
 0x375   :  { %2548 = vmatpush1.bf16.msra.mxu0 %v3228_v26  ;;  %2580 = vmatpush1.bf16.msra.mxu1 %v3246_v49 }
 0x376   :  { %2550 = vmatprep.subr.bf16.mxu0 %v3233_v31  ;;  %2582 = vmatprep.subr.bf16.mxu1 %v3250_v50 }
 0x379   :  { %2552 = vmatpush1.bf16.msra.mxu0 %v3240_v39  ;;  %2584 = vmatpush1.bf16.msra.mxu1 %v3255_v54 }
 0x37a   :  { %2586 = vmatprep.subr.bf16.mxu0 %v3140_v8  ;;  %2618 = vmatprep.subr.bf16.mxu1 %v3164_v24 }
 0x42f   :  { %v930_v61 = vpop.f32.mrb[6].mxu0  ;;  %v1001_v21 = vpop.f32.mrb[14].mxu1 }
 0x430   :  { %v1010_v43 = vrot.slane %v930_v61, 2  ;;  %v932_v44 = vpop.f32.mrb[7].mxu0  ;;  %v1003_v45 = vpop.f32.mrb[15].mxu1  ;;  %v1012_v4 = vrot.slane %v1001_v21, 2 }
 0x431   :  { %v1011_v53 = vrot.slane %v932_v44, 2  ;;  %v1013_v2 = vrot.slane %v1003_v45, 2 }
 0x432   :  { %v1018_v56 = vadd.f32 %v1010_v43, %v3306_v34  ;;  %v1020_v11 = vadd.f32 %v1012_v4, %v3315_v62 }
 0x433   :  { %v1019_v57 = vadd.f32 %v1011_v53, %v3308_v37  ;;  %v1021_v3 = vadd.f32 %v1013_v2, %v3312_v55 }
 0x434   :  { %v2091_v51 = vmul.f32 -1.442695, %v1018_v56 }
 0x435   :  { %v2092_v63 = vmul.f32 -1.442695, %v1019_v57  ;;  %v2093_v17 = vmul.f32 -1.442695, %v1021_v3 }
 0x436   :  { %2906 = vpow2.f32 %v2091_v51 }
 0x437   :  { %2908 = vpow2.f32 %v2092_v63 }
 0x438   :  { %2910 = vpow2.f32 %v2093_v17 }
 0x439   :  { %2912 = vtanh.f32 %v1020_v11 }
 0x440   :  { %v2907_v14 = vpop.eup %2906 }
 0x441   :  { %v2909_v18 = vpop.eup %2908  ;;  %v1025_v5 = vadd.f32 1.0, %v2907_v14 }
 0x442   :  { %v1031_v22 = vadd.f32 1.0, %v2909_v18  ;;  %v2911_v34 = vpop.eup %2910 }
 0x443   :  { %2914 = vrcp.f32 %v1025_v5  ;;  %v2913_v37 = vpop.eup %2912  ;;  %v1038_v55 = vadd.f32 1.0, %v2911_v34 }
 0x444   :  { %2916 = vrcp.f32 %v1031_v22 }
 0x445   :  { %2918 = vrcp.f32 %v1038_v55 }
 0x44d   :  { %v2915_v28 = vpop.eup %2914 }
 0x44e   :  { %v2917_v42 = vpop.eup %2916  ;;  %v1045_v61 = vmul.f32 %v2915_v28, %v2913_v37 }
 0x44f   :  { %v1044_v21 = vmul.f32 %v2917_v42, %v1042_v30  ;;  %v2919_v62 = vpop.eup %2918 }
 0x451   :  { %v3444_v43 = vadd.f32 %v1045_v61, %v1044_v21 }
 0x453   :  { %2920 = vtanh.f32 %v3444_v43  ;;  %v1218_v42 = vrot.slane %v3444_v43, 6 }
 0x45d   :  { %v2921_v44 = vpop.eup %2920 }
 0x45e   :  { %v1048_v45 = vmul.f32 %v2921_v44, %v2919_v62 }
 0x460   :  { %v1050_v53 = vrot.slane %v1048_v45, 6 }
 0x462   :  { %1117 = vmatmul.mubr.f32.vlgmr.msra.gmra.mrb[8].mxu0 %v1050_v53  ;;  %1188 = vmatmul.mubr.f32.vlgmr.msra.gmra.mrb[16].mxu1 %v1050_v53 }
 0x463   :  { %2588 = vmatpush1.bf16.msra.mxu0 %v3148_v12  ;;  %2620 = vmatpush1.bf16.msra.mxu1 %v3172_v32 }
 0x464   :  { %2590 = vmatprep.subr.bf16.mxu0 %v3155_v16  ;;  %2622 = vmatprep.subr.bf16.mxu1 %v3177_v36 }
 0x465   :  { %1289 = vmatprep.mubr.f32.mxu0 %v3044_v1  ;;  %1360 = vmatprep.mubr.f32.mxu1 %v3044_v1 }
 0x467   :  { %2592 = vmatpush1.bf16.msra.mxu0 %v3161_v20  ;;  %2624 = vmatpush1.bf16.msra.mxu1 %v3184_v46 }
 0x468   :  { %2594 = vmatprep.subr.bf16.mxu0 %v3166_v25  ;;  %2626 = vmatprep.subr.bf16.mxu1 %v3191_v48 }
 0x46b   :  { %2596 = vmatpush1.bf16.msra.mxu0 %v3175_v35  ;;  %2628 = vmatpush1.bf16.msra.mxu1 %v3199_v58 }
 0x46c   :  { %2598 = vmatprep.subr.bf16.mxu0 %v3180_v40  ;;  %2630 = vmatprep.subr.bf16.mxu1 %v3206_v60 }
 0x46f   :  { %2600 = vmatpush1.bf16.msra.mxu0 %v3189_v47  ;;  %2632 = vmatpush1.bf16.msra.mxu1 %v3212_v7 }
 0x470   :  { %2602 = vmatprep.subr.bf16.mxu0 %v3194_v52  ;;  %2634 = vmatprep.subr.bf16.mxu1 %v3218_v10 }
 0x473   :  { %2604 = vmatpush1.bf16.msra.mxu0 %v3204_v59  ;;  %2636 = vmatpush1.bf16.msra.mxu1 %v3224_v23 }
 0x474   :  { %2606 = vmatprep.subr.bf16.mxu0 %v3209_v0  ;;  %2638 = vmatprep.subr.bf16.mxu1 %v3230_v27 }
 0x477   :  { %2608 = vmatpush1.bf16.msra.mxu0 %v3216_v9  ;;  %2640 = vmatpush1.bf16.msra.mxu1 %v3236_v38 }
 0x478   :  { %2610 = vmatprep.subr.bf16.mxu0 %v3221_v15  ;;  %2642 = vmatprep.subr.bf16.mxu1 %v3242_v41 }
 0x47b   :  { %2612 = vmatpush1.bf16.msra.mxu0 %v3228_v26  ;;  %2644 = vmatpush1.bf16.msra.mxu1 %v3246_v49 }
 0x47c   :  { %2614 = vmatprep.subr.bf16.mxu0 %v3233_v31  ;;  %2646 = vmatprep.subr.bf16.mxu1 %v3250_v50 }
 0x47f   :  { %2616 = vmatpush1.bf16.msra.mxu0 %v3240_v39  ;;  %2648 = vmatpush1.bf16.msra.mxu1 %v3255_v54 }
 0x480   :  { %2650 = vmatprep.subr.bf16.mxu0 %v3140_v8  ;;  %2682 = vmatprep.subr.bf16.mxu1 %v3164_v24 }
 0x535   :  { %v1118_v19 = vpop.f32.mrb[8].mxu0  ;;  %v1189_v56 = vpop.f32.mrb[16].mxu1 }
 0x536   :  { %v1194_v57 = vadd.f32 %v1118_v19, %v3298_v6  ;;  %v1120_v51 = vpop.f32.mrb[9].mxu0  ;;  %v1191_v63 = vpop.f32.mrb[17].mxu1  ;;  %v1196_v14 = vadd.f32 %v1189_v56, %v3302_v29 }
 0x537   :  { %v1195_v2 = vadd.f32 %v1120_v51, %v3300_v13  ;;  %v1197_v17 = vadd.f32 %v1191_v63, %v3304_v33 }
 0x538   :  { %v2094_v3 = vmul.f32 -1.442695, %v1194_v57 }
 0x539   :  { %v2095_v4 = vmul.f32 -1.442695, %v1195_v2  ;;  %v2096_v11 = vmul.f32 -1.442695, %v1197_v17 }
 0x53a   :  { %2922 = vpow2.f32 %v2094_v3 }
 0x53b   :  { %2924 = vpow2.f32 %v2095_v4 }
 0x53c   :  { %2926 = vpow2.f32 %v2096_v11 }
 0x53d   :  { %2928 = vtanh.f32 %v1196_v14 }
 0x544   :  { %v2923_v18 = vpop.eup %2922 }
 0x545   :  { %v2925_v5 = vpop.eup %2924  ;;  %v1201_v22 = vadd.f32 1.0, %v2923_v18 }
 0x546   :  { %v1207_v34 = vadd.f32 1.0, %v2925_v5  ;;  %v2927_v37 = vpop.eup %2926 }
 0x547   :  { %2930 = vrcp.f32 %v1201_v22  ;;  %v2929_v28 = vpop.eup %2928  ;;  %v1214_v21 = vadd.f32 1.0, %v2927_v37 }
 0x548   :  { %2932 = vrcp.f32 %v1207_v34 }
 0x549   :  { %2934 = vrcp.f32 %v1214_v21 }
 0x551   :  { %v2931_v30 = vpop.eup %2930 }
 0x552   :  { %v2933_v61 = vpop.eup %2932  ;;  %v1221_v55 = vmul.f32 %v2931_v30, %v2929_v28 }
 0x553   :  { %v1220_v62 = vmul.f32 %v2933_v61, %v1218_v42  ;;  %v2935_v45 = vpop.eup %2934 }
 0x555   :  { %v3486_v44 = vadd.f32 %v1221_v55, %v1220_v62 }
 0x557   :  { %2936 = vtanh.f32 %v3486_v44  ;;  %v1403_v55 = vrot.slane %v3486_v44, 6 }
 0x561   :  { %v2937_v53 = vpop.eup %2936 }
 0x562   :  { %v1224_v19 = vmul.f32 %v2937_v53, %v2935_v45 }
 0x564   :  { %1290 = vmatmul.mubr.f32.vlgmr.msra.gmra.mrb[10].mxu0 %v1224_v19  ;;  %1361 = vmatmul.mubr.f32.vlgmr.msra.gmra.mrb[18].mxu1 %v1224_v19 }
 0x565   :  { %2652 = vmatpush1.bf16.msra.mxu0 %v3148_v12  ;;  %2684 = vmatpush1.bf16.msra.mxu1 %v3172_v32 }
 0x566   :  { %2654 = vmatprep.subr.bf16.mxu0 %v3155_v16  ;;  %2686 = vmatprep.subr.bf16.mxu1 %v3177_v36 }
 0x567   :  { %1477 = vmatprep.mubr.f32.mxu0 %v3044_v1  ;;  %1548 = vmatprep.mubr.f32.mxu1 %v3044_v1 }
 0x569   :  { %2656 = vmatpush1.bf16.msra.mxu0 %v3161_v20  ;;  %2688 = vmatpush1.bf16.msra.mxu1 %v3184_v46 }
 0x56a   :  { %2658 = vmatprep.subr.bf16.mxu0 %v3166_v25  ;;  %2690 = vmatprep.subr.bf16.mxu1 %v3191_v48 }
 0x56d   :  { %2660 = vmatpush1.bf16.msra.mxu0 %v3175_v35  ;;  %2692 = vmatpush1.bf16.msra.mxu1 %v3199_v58 }
 0x56e   :  { %2662 = vmatprep.subr.bf16.mxu0 %v3180_v40  ;;  %2694 = vmatprep.subr.bf16.mxu1 %v3206_v60 }
 0x571   :  { %2664 = vmatpush1.bf16.msra.mxu0 %v3189_v47  ;;  %2696 = vmatpush1.bf16.msra.mxu1 %v3212_v7 }
 0x572   :  { %2666 = vmatprep.subr.bf16.mxu0 %v3194_v52  ;;  %2698 = vmatprep.subr.bf16.mxu1 %v3218_v10 }
 0x575   :  { %2668 = vmatpush1.bf16.msra.mxu0 %v3204_v59  ;;  %2700 = vmatpush1.bf16.msra.mxu1 %v3224_v23 }
 0x576   :  { %2670 = vmatprep.subr.bf16.mxu0 %v3209_v0  ;;  %2702 = vmatprep.subr.bf16.mxu1 %v3230_v27 }
 0x579   :  { %2672 = vmatpush1.bf16.msra.mxu0 %v3216_v9  ;;  %2704 = vmatpush1.bf16.msra.mxu1 %v3236_v38 }
 0x57a   :  { %2674 = vmatprep.subr.bf16.mxu0 %v3221_v15  ;;  %2706 = vmatprep.subr.bf16.mxu1 %v3242_v41 }
 0x57d   :  { %2676 = vmatpush1.bf16.msra.mxu0 %v3228_v26  ;;  %2708 = vmatpush1.bf16.msra.mxu1 %v3246_v49 }
 0x57e   :  { %2678 = vmatprep.subr.bf16.mxu0 %v3233_v31  ;;  %2710 = vmatprep.subr.bf16.mxu1 %v3250_v50 }
 0x581   :  { %2680 = vmatpush1.bf16.msra.mxu0 %v3240_v39  ;;  %2712 = vmatpush1.bf16.msra.mxu1 %v3255_v54 }
 0x582   :  { %2714 = vmatprep.subr.bf16.mxu0 %v3140_v8  ;;  %2746 = vmatprep.subr.bf16.mxu1 %v3164_v24 }
 0x637   :  { %v1291_v43 = vpop.f32.mrb[10].mxu0  ;;  %v1362_v56 = vpop.f32.mrb[18].mxu1 }
 0x638   :  { %v1371_v57 = vrot.slane %v1291_v43, 6  ;;  %v1293_v51 = vpop.f32.mrb[11].mxu0  ;;  %v1364_v63 = vpop.f32.mrb[19].mxu1  ;;  %v1373_v8 = vrot.slane %v1362_v56, 6 }
 0x639   :  { %v1372_v2 = vrot.slane %v1293_v51, 6  ;;  %v1374_v14 = vrot.slane %v1364_v63, 6 }
 0x63a   :  { %v1379_v3 = vadd.f32 %v1371_v57, %v3298_v6  ;;  %v1381_v24 = vadd.f32 %v1373_v8, %v3302_v29  ;;  %v1790_v8 = vld [vmem:[%s3715_s4 + $0x20] sm:$0xff] }
 0x63b   :  { %v1380_v4 = vadd.f32 %v1372_v2, %v3300_v13  ;;  %v1382_v18 = vadd.f32 %v1374_v14, %v3304_v33  ;;  %v1786_v2 = vld [vmem:[%s3715_s4] sm:$0xff]  ;;  %v1789_v14 = vld [vmem:[%s3715_s4 + $0x18] sm:$0xff] }
 0x63c   :  { %v2097_v17 = vmul.f32 -1.442695, %v1379_v3  ;;  %v1787_v3 = vld [vmem:[%s3715_s4 + $0x8] sm:$0xff] }
 0x63d   :  { %v2098_v11 = vmul.f32 -1.442695, %v1380_v4  ;;  %v2099_v5 = vmul.f32 -1.442695, %v1382_v18  ;;  %v2778_v4 = vpack.c.bf16 %v1787_v3, %v1786_v2 }
 0x63e   :  { %2938 = vpow2.f32 %v2097_v17  ;;  %v3045_v17 = vmov 0.0|0.0  }
 0x63f   :  { %2940 = vpow2.f32 %v2098_v11  ;;  %v1788_v11 = vld [vmem:[%s3715_s4 + $0x10] sm:$0xff] }
 0x640   :  { %2942 = vpow2.f32 %v2099_v5  ;;  %v2781_v18 = vpack.c.bf16 %v1789_v14, %v1788_v11  ;;  %v1791_v5 = vld [vmem:[%s3715_s4 + $0x28] sm:$0xff] }
 0x641   :  { %2944 = vtanh.f32 %v1381_v24  ;;  %v2784_v24 = vpack.c.bf16 %v1791_v5, %v1790_v8 }
 0x648   :  { %v2939_v22 = vpop.eup %2938 }
 0x649   :  { %v2941_v34 = vpop.eup %2940  ;;  %v1386_v37 = vadd.f32 1.0, %v2939_v22  ;;  %v1792_v22 = vld [vmem:[%s3715_s4 + $0x30] sm:$0xff] }
 0x64a   :  { %v1392_v28 = vadd.f32 1.0, %v2941_v34  ;;  %v2943_v30 = vpop.eup %2942  ;;  %v1793_v34 = vld [vmem:[%s3715_s4 + $0x38] sm:$0xff] }
 0x64b   :  { %2946 = vrcp.f32 %v1386_v37  ;;  %v2945_v42 = vpop.eup %2944  ;;  %v1399_v45 = vadd.f32 1.0, %v2943_v30  ;;  %v2787_v37 = vpack.c.bf16 %v1793_v34, %v1792_v22  ;;  %v1795_v30 = vld [vmem:[%s3715_s4 + $0x48] sm:$0xff]  ;;  %v1893_v34 = vld [vmem:[#allocation5 + $0x50] sm:$0xff] }
 0x64c   :  { %2948 = vrcp.f32 %v1392_v28  ;;  %v1794_v28 = vld [vmem:[%s3715_s4 + $0x40] sm:$0xff] }
 0x64d   :  { %2950 = vrcp.f32 %v1399_v45  ;;  %v1799_v45 = vld [vmem:[%s3715_s4 + $0x68] sm:$0xff] }
 0x655   :  { %v2947_v61 = vpop.eup %2946 }
 0x656   :  { %v2949_v21 = vpop.eup %2948  ;;  %v1406_v62 = vmul.f32 %v2947_v61, %v2945_v42  ;;  %v2790_v42 = vpack.c.bf16 %v1795_v30, %v1794_v28  ;;  %v1796_v61 = vld [vmem:[%s3715_s4 + $0x50] sm:$0xff]  ;;  %v1895_v30 = vld [vmem:[#allocation5 + $0x60] sm:$0xff] }
 0x657   :  { %v1405_v53 = vmul.f32 %v2949_v21, %v1403_v55  ;;  %v2951_v43 = vpop.eup %2950  ;;  %v1797_v55 = vld [vmem:[%s3715_s4 + $0x58] sm:$0xff] }
 0x658   :  { %v2793_v21 = vpack.c.bf16 %v1797_v55, %v1796_v61  ;;  %v1897_v61 = vld [vmem:[#allocation5 + $0x70] sm:$0xff]  ;;  %v1898_v55 = vld [vmem:[#allocation5 + $0x78] sm:$0xff] }
 0x659   :  { %v3528_v19 = vadd.f32 %v1406_v62, %v1405_v53  ;;  %v1798_v62 = vld [vmem:[%s3715_s4 + $0x60] sm:$0xff] }
 0x65a   :  { %v2796_v53 = vpack.c.bf16 %v1799_v45, %v1798_v62  ;;  %v1978_v62 = vld [vmem:[%s3719_s8 + $0x8] sm:$0xff]  ;;  %v1979_v45 = vld [vmem:[%s3719_s8 + $0x10] sm:$0xff] }
 0x65b   :  { %2952 = vtanh.f32 %v3528_v19 }
 0x665   :  { %v2953_v56 = vpop.eup %2952 }
 0x666   :  { %v1409_v57 = vmul.f32 %v2953_v56, %v2951_v43  ;;  %v1801_v43 = vld [vmem:[%s3715_s4 + $0x78] sm:$0xff] }
 0x668   :  { %v1411_v51 = vrot.slane %v1409_v57, 2  ;;  %v1883_v57 = vld [vmem:[#allocation5] sm:$0xff] }
 0x66a   :  { %1478 = vmatmul.mubr.f32.vlgmr.msra.gmra.mrb[12].mxu0 %v1411_v51  ;;  %1549 = vmatmul.mubr.f32.vlgmr.msra.gmra.mrb[20].mxu1 %v1411_v51  ;;  %v1884_v51 = vld [vmem:[#allocation5 + $0x8] sm:$0xff] }
 0x66b   :  { %2716 = vmatpush1.bf16.msra.mxu0 %v3148_v12  ;;  %2748 = vmatpush1.bf16.msra.mxu1 %v3172_v32 }
 0x66c   :  { %2718 = vmatprep.subr.bf16.mxu0 %v3155_v16  ;;  %2750 = vmatprep.subr.bf16.mxu1 %v3177_v36 }
 0x66d   :  { %1665 = vmatprep.mubr.f32.mxu0 %v3044_v1  ;;  %1736 = vmatprep.mubr.f32.mxu1 %v3044_v1 }
 0x66f   :  { %2720 = vmatpush1.bf16.msra.mxu0 %v3161_v20  ;;  %2752 = vmatpush1.bf16.msra.mxu1 %v3184_v46 }
 0x670   :  { %2722 = vmatprep.subr.bf16.mxu0 %v3166_v25  ;;  %2754 = vmatprep.subr.bf16.mxu1 %v3191_v48 }
 0x673   :  { %2724 = vmatpush1.bf16.msra.mxu0 %v3175_v35  ;;  %2756 = vmatpush1.bf16.msra.mxu1 %v3199_v58 }
 0x674   :  { %2726 = vmatprep.subr.bf16.mxu0 %v3180_v40  ;;  %2758 = vmatprep.subr.bf16.mxu1 %v3206_v60 }
 0x677   :  { %2728 = vmatpush1.bf16.msra.mxu0 %v3189_v47  ;;  %2760 = vmatpush1.bf16.msra.mxu1 %v3212_v7 }
 0x678   :  { %2730 = vmatprep.subr.bf16.mxu0 %v3194_v52  ;;  %2762 = vmatprep.subr.bf16.mxu1 %v3218_v10 }
 0x67b   :  { %2732 = vmatpush1.bf16.msra.mxu0 %v3204_v59  ;;  %2764 = vmatpush1.bf16.msra.mxu1 %v3224_v23 }
 0x67c   :  { %2734 = vmatprep.subr.bf16.mxu0 %v3209_v0  ;;  %2766 = vmatprep.subr.bf16.mxu1 %v3230_v27  ;;  %v1591_v27 = vrot.slane %v3528_v19, 6  ;;  %v1800_v19 = vld [vmem:[%s3715_s4 + $0x70] sm:$0xff] }
 0x67d   :  { %v2799_v56 = vpack.c.bf16 %v1801_v43, %v1800_v19  ;;  %v1980_v19 = vld [vmem:[%s3719_s8 + $0x18] sm:$0xff] }
 0x67e   :  { %v2829_v43 = vpack.c.bf16 %v1980_v19, %v1979_v45 }
 0x67f   :  { %2736 = vmatpush1.bf16.msra.mxu0 %v3216_v9  ;;  %2768 = vmatpush1.bf16.msra.mxu1 %v3236_v38 }
 0x680   :  { %2738 = vmatprep.subr.bf16.mxu0 %v3221_v15  ;;  %2770 = vmatprep.subr.bf16.mxu1 %v3242_v41 }
 0x683   :  { %2740 = vmatpush1.bf16.msra.mxu0 %v3228_v26  ;;  %2772 = vmatpush1.bf16.msra.mxu1 %v3246_v49 }
 0x684   :  { %2742 = vmatprep.subr.bf16.mxu0 %v3233_v31  ;;  %2774 = vmatprep.subr.bf16.mxu1 %v3250_v50 }
 0x687   :  { %2744 = vmatpush1.bf16.msra.mxu0 %v3240_v39  ;;  %2776 = vmatpush1.bf16.msra.mxu1 %v3255_v54 }
 0x688   :  { %2777 = vmatprep.subr.bf16.mxu0 %v3045_v17  ;;  %2801 = vmatprep.subr.bf16.mxu1 %v3045_v17 }
 0x73d   :  { %v1479_v12 = vpop.f32.mrb[12].mxu0  ;;  %v1550_v16 = vpop.f32.mrb[20].mxu1 }
 0x73e   :  { %v1559_v20 = vrot.slane %v1479_v12, 4  ;;  %v1481_v25 = vpop.f32.mrb[13].mxu0  ;;  %v1552_v32 = vpop.f32.mrb[21].mxu1  ;;  %v1561_v58 = vrot.slane %v1550_v16, 4  ;;  %v1885_v12 = vld [vmem:[#allocation5 + $0x10] sm:$0xff]  ;;  %v2802_v16 = vpack.c.bf16 %v1884_v51, %v1883_v57  ;;  %v1982_v57 = vld [vmem:[%s3719_s8 + $0x28] sm:$0xff] }
 0x73f   :  { %v1560_v35 = vrot.slane %v1481_v25, 4  ;;  %v1562_v48 = vrot.slane %v1552_v32, 4  ;;  %v1887_v32 = vld [vmem:[#allocation5 + $0x20] sm:$0xff] }
 0x740   :  { %v1567_v36 = vadd.f32 %v1559_v20, %v3298_v6  ;;  %v1569_v60 = vadd.f32 %v1561_v58, %v3302_v29  ;;  %v1886_v20 = vld [vmem:[#allocation5 + $0x18] sm:$0xff] }
 0x741   :  { %v1568_v40 = vadd.f32 %v1560_v35, %v3300_v13  ;;  %v1570_v52 = vadd.f32 %v1562_v48, %v3304_v33  ;;  %v2805_v25 = vpack.c.bf16 %v1886_v20, %v1885_v12  ;;  %v1888_v35 = vld [vmem:[#allocation5 + $0x28] sm:$0xff]  ;;  %v1891_v48 = vld [vmem:[#allocation5 + $0x40] sm:$0xff] }
 0x742   :  { %v2100_v46 = vmul.f32 -1.442695, %v1567_v36  ;;  %v2808_v36 = vpack.c.bf16 %v1888_v35, %v1887_v32  ;;  %v1983_v12 = vld [vmem:[%s3719_s8 + $0x30] sm:$0xff]  ;;  %v1986_v32 = vld [vmem:[%s3719_s8 + $0x48] sm:$0xff] }
 0x743   :  { %v2101_v47 = vmul.f32 -1.442695, %v1568_v40  ;;  %v2102_v59 = vmul.f32 -1.442695, %v1570_v52  ;;  %v1889_v40 = vld [vmem:[#allocation5 + $0x30] sm:$0xff]  ;;  %v1892_v52 = vld [vmem:[#allocation5 + $0x48] sm:$0xff] }
 0x744   :  { %2954 = vpow2.f32 %v2100_v46  ;;  %v1890_v46 = vld [vmem:[#allocation5 + $0x38] sm:$0xff]  ;;  %v2814_v58 = vpack.c.bf16 %v1892_v52, %v1891_v48  ;;  %v1987_v52 = vld [vmem:[%s3719_s8 + $0x50] sm:$0xff] }
 0x745   :  { %2956 = vpow2.f32 %v2101_v47  ;;  %v2811_v47 = vpack.c.bf16 %v1890_v46, %v1889_v40 }
 0x746   :  { %2958 = vpow2.f32 %v2102_v59 }
 0x747   :  { %2960 = vtanh.f32 %v1569_v60 }
 0x74e   :  { %v2955_v0 = vpop.eup %2954 }
 0x74f   :  { %v2957_v7 = vpop.eup %2956  ;;  %v1574_v9 = vadd.f32 1.0, %v2955_v0 }
 0x750   :  { %v1580_v10 = vadd.f32 1.0, %v2957_v7  ;;  %v2959_v15 = vpop.eup %2958 }
 0x751   :  { %2962 = vrcp.f32 %v1574_v9  ;;  %v2961_v23 = vpop.eup %2960  ;;  %v1587_v39 = vadd.f32 1.0, %v2959_v15 }
 0x752   :  { %2964 = vrcp.f32 %v1580_v10 }
 0x753   :  { %2966 = vrcp.f32 %v1587_v39 }
 0x75b   :  { %v2963_v26 = vpop.eup %2962 }
 0x75c   :  { %v2965_v31 = vpop.eup %2964  ;;  %v1594_v38 = vmul.f32 %v2963_v26, %v2961_v23 }
 0x75d   :  { %v1593_v41 = vmul.f32 %v2965_v31, %v1591_v27  ;;  %v2967_v50 = vpop.eup %2966 }
 0x75f   :  { %v3568_v49 = vadd.f32 %v1594_v38, %v1593_v41 }
 0x761   :  { %2968 = vtanh.f32 %v3568_v49 }
 0x76b   :  { %v2969_v54 = vpop.eup %2968 }
 0x76c   :  { %v1597_v44 = vmul.f32 %v2969_v54, %v2967_v50 }
 0x76e   :  { %v1599_v63 = vrot.slane %v1597_v44, 4 }
 0x770   :  { %1666 = vmatmul.mubr.f32.vlgmr.msra.gmra.mrb[14].mxu0 %v1599_v63  ;;  %1737 = vmatmul.mubr.f32.vlgmr.msra.gmra.mrb[22].mxu1 %v1599_v63 }
 0x771   :  { %2779 = vmatpush3.bf16.msra.mxu0 %v2778_v4  ;;  %2192 = vmatprep.mubr.msk.f32.mxu0 %vm3046_vm1, %v3044_v1  ;;  %v1779_v4 = vrot.slane %v3568_v49, 6  ;;  %v1896_v49 = vld [vmem:[#allocation5 + $0x68] sm:$0xff] }
 0x772   :  { %2780 = vmatprep.subr.bf16.mxu0 %v3045_v17  ;;  %2227 = vmatprep.mubr.msk.f32.mxu1 %vm3046_vm1, %v3044_v1 }
 0x773   :  { %2803 = vmatpush3.bf16.msra.mxu1 %v2802_v16  ;;  %v1984_v16 = vld [vmem:[%s3719_s8 + $0x38] sm:$0xff] }
 0x774   :  { %2804 = vmatprep.subr.bf16.mxu1 %v3045_v17  ;;  %v2835_v20 = vpack.c.bf16 %v1984_v16, %v1983_v12 }
 0x775   :  { %2782 = vmatpush3.bf16.msra.mxu0 %v2781_v18 }
 0x776   :  { %2783 = vmatprep.subr.bf16.mxu0 %v3045_v17 }
 0x777   :  { %2806 = vmatpush3.bf16.msra.mxu1 %v2805_v25  ;;  %v1985_v25 = vld [vmem:[%s3719_s8 + $0x40] sm:$0xff] }
 0x778   :  { %2807 = vmatprep.subr.bf16.mxu1 %v3045_v17  ;;  %v2838_v35 = vpack.c.bf16 %v1986_v32, %v1985_v25 }
 0x779   :  { %2785 = vmatpush3.bf16.msra.mxu0 %v2784_v24 }
 0x77a   :  { %2786 = vmatprep.subr.bf16.mxu0 %v3045_v17 }
 0x77b   :  { %2809 = vmatpush3.bf16.msra.mxu1 %v2808_v36  ;;  %v2106_v36 = vld [vmem:[%s3716_s5] ss:$0 sm:$0xff] }
 0x77c   :  { %2810 = vmatprep.subr.bf16.mxu1 %v3045_v17 }
 0x77d   :  { %2788 = vmatpush3.bf16.msra.mxu0 %v2787_v37  ;;  %v1894_v37 = vld [vmem:[#allocation5 + $0x58] sm:$0xff] }
 0x77e   :  { %2789 = vmatprep.subr.bf16.mxu0 %v3045_v17  ;;  %v2817_v28 = vpack.c.bf16 %v1894_v37, %v1893_v34 }
 0x77f   :  { %2812 = vmatpush3.bf16.msra.mxu1 %v2811_v47 }
 0x780   :  { %2813 = vmatprep.subr.bf16.mxu1 %v3045_v17 }
 0x781   :  { %2791 = vmatpush3.bf16.msra.mxu0 %v2790_v42  ;;  %v2820_v42 = vpack.c.bf16 %v1896_v49, %v1895_v30 }
 0x782   :  { %2792 = vmatprep.subr.bf16.mxu0 %v3045_v17 }
 0x783   :  { %2815 = vmatpush3.bf16.msra.mxu1 %v2814_v58  ;;  %v1988_v58 = vld [vmem:[%s3719_s8 + $0x58] sm:$0xff] }
 0x784   :  { %2816 = vmatprep.subr.bf16.mxu1 %v3045_v17 }
 0x785   :  { %2794 = vmatpush3.bf16.msra.mxu0 %v2793_v21  ;;  %v2823_v21 = vpack.c.bf16 %v1898_v55, %v1897_v61 }
 0x786   :  { %2795 = vmatprep.subr.bf16.mxu0 %v3045_v17 }
 0x787   :  { %2818 = vmatpush3.bf16.msra.mxu1 %v2817_v28 }
 0x788   :  { %2819 = vmatprep.subr.bf16.mxu1 %v3045_v17 }
 0x789   :  { %2797 = vmatpush3.bf16.msra.mxu0 %v2796_v53 }
 0x78a   :  { %2798 = vmatprep.subr.bf16.mxu0 %v3045_v17 }
 0x78b   :  { %2821 = vmatpush3.bf16.msra.mxu1 %v2820_v42 }
 0x78c   :  { %2822 = vmatprep.subr.bf16.mxu1 %v3045_v17 }
 0x78d   :  { %2800 = vmatpush3.bf16.msra.mxu0 %v2799_v56  ;;  %v1981_v56 = vld [vmem:[%s3719_s8 + $0x20] sm:$0xff] }
 0x78e   :  { %2825 = vmatprep.subr.bf16.mxu0 %v3045_v17  ;;  %v2832_v51 = vpack.c.bf16 %v1982_v57, %v1981_v56 }
 0x78f   :  { %2824 = vmatpush3.bf16.msra.mxu1 %v2823_v21 }
 0x843   :  { %v1667_v59 = vpop.f32.mrb[14].mxu0  ;;  %v1738_v60 = vpop.f32.mrb[22].mxu1 }
 0x844   :  { %v1747_v0 = vrot.slane %v1667_v59, 2  ;;  %v1669_v7 = vpop.f32.mrb[15].mxu0  ;;  %v1740_v9 = vpop.f32.mrb[23].mxu1  ;;  %v1749_v39 = vrot.slane %v1738_v60, 2  ;;  %v2841_v59 = vpack.c.bf16 %v1988_v58, %v1987_v52  ;;  %v1989_v60 = vld [vmem:[%s3719_s8 + $0x60] sm:$0xff] }
 0x845   :  { %v1748_v10 = vrot.slane %v1669_v7, 2  ;;  %v1750_v31 = vrot.slane %v1740_v9, 2  ;;  %v1991_v9 = vld [vmem:[%s3719_s8 + $0x70] sm:$0xff] }
 0x846   :  { %v1755_v15 = vadd.f32 %v1747_v0, %v3298_v6  ;;  %v1757_v50 = vadd.f32 %v1749_v39, %v3302_v29  ;;  %v1990_v0 = vld [vmem:[%s3719_s8 + $0x68] sm:$0xff]  ;;  %v2108_v39 = vld [vmem:[#allocation2] ss:$0 sm:$0xff] }
 0x847   :  { %v1756_v23 = vadd.f32 %v1748_v10, %v3300_v13  ;;  %v1758_v38 = vadd.f32 %v1750_v31, %v3304_v33  ;;  %v2844_v7 = vpack.c.bf16 %v1990_v0, %v1989_v60  ;;  %v1992_v10 = vld [vmem:[%s3719_s8 + $0x78] sm:$0xff] }
 0x848   :  { %v2103_v26 = vmul.f32 -1.442695, %v1755_v15  ;;  %v2847_v15 = vpack.c.bf16 %v1992_v10, %v1991_v9 }
 0x849   :  { %v2104_v27 = vmul.f32 -1.442695, %v1756_v23  ;;  %v2105_v41 = vmul.f32 -1.442695, %v1758_v38  ;;  %v2107_v23 = vld [vmem:[%s3718_s7] ss:$0 sm:$0xff] }
 0x84a   :  { %2970 = vpow2.f32 %v2103_v26 }
 0x84b   :  { %2972 = vpow2.f32 %v2104_v27 }
 0x84c   :  { %2974 = vpow2.f32 %v2105_v41 }
 0x84d   :  { %2976 = vtanh.f32 %v1757_v50 }
 0x854   :  { %v2971_v54 = vpop.eup %2970 }
 0x855   :  { %v2973_v44 = vpop.eup %2972  ;;  %v1762_v63 = vadd.f32 1.0, %v2971_v54 }
 0x856   :  { %v1768_v2 = vadd.f32 1.0, %v2973_v44  ;;  %v2975_v6 = vpop.eup %2974 }
 0x857   :  { %2978 = vrcp.f32 %v1762_v63  ;;  %v2977_v13 = vpop.eup %2976  ;;  %v1775_v33 = vadd.f32 1.0, %v2975_v6 }
 0x858   :  { %2980 = vrcp.f32 %v1768_v2 }
 0x859   :  { %2982 = vrcp.f32 %v1775_v33 }
 0x861   :  { %v2979_v3 = vpop.eup %2978 }
 0x862   :  { %v2981_v11 = vpop.eup %2980  ;;  %v1782_v14 = vmul.f32 %v2979_v3, %v2977_v13 }
 0x863   :  { %v1781_v18 = vmul.f32 %v2981_v11, %v1779_v4  ;;  %v2983_v29 = vpop.eup %2982 }
 0x865   :  { %v1783_v8 = vadd.f32 %v1782_v14, %v1781_v18 }
 0x867   :  { %2984 = vtanh.f32 %v1783_v8 }
 0x871   :  { %v2985_v5 = vpop.eup %2984 }
 0x872   :  { %v1785_v24 = vmul.f32 %v2985_v5, %v2983_v29 }
 0x874   :  { %v1810_v22 = vrot.slane %v1785_v24, 6 }
 0x876   :  { %2193 = vmatmul.mubr.f32.vlgmr.msra.gmra.mrb[16].mxu0 %v1810_v22 }
 0x877   :  { %2262 = vmatprep.mubr.msk.f32.mxu0 %vm3046_vm1, %v3044_v1  ;;  %v1977_v1 = vld [vmem:[%s3719_s8] sm:$0xff] }
 0x878   :  { %v2826_v53 = vpack.c.bf16 %v1978_v62, %v1977_v1 }
 0x87a   :  { %2827 = vmatpush3.bf16.msra.mxu0 %v2826_v53 }
 0x87b   :  { %2828 = vmatprep.subr.bf16.mxu0 %v3045_v17 }
 0x87e   :  { %2830 = vmatpush3.bf16.msra.mxu0 %v2829_v43 }
 0x87f   :  { %2831 = vmatprep.subr.bf16.mxu0 %v3045_v17 }
 0x882   :  { %2833 = vmatpush3.bf16.msra.mxu0 %v2832_v51 }
 0x883   :  { %2834 = vmatprep.subr.bf16.mxu0 %v3045_v17 }
 0x886   :  { %2836 = vmatpush3.bf16.msra.mxu0 %v2835_v20 }
 0x887   :  { %2837 = vmatprep.subr.bf16.mxu0 %v3045_v17 }
 0x88a   :  { %2839 = vmatpush3.bf16.msra.mxu0 %v2838_v35 }
 0x88b   :  { %2840 = vmatprep.subr.bf16.mxu0 %v3045_v17 }
 0x88e   :  { %2842 = vmatpush3.bf16.msra.mxu0 %v2841_v59 }
 0x88f   :  { %2843 = vmatprep.subr.bf16.mxu0 %v3045_v17 }
 0x892   :  { %2845 = vmatpush3.bf16.msra.mxu0 %v2844_v7 }
 0x893   :  { %2846 = vmatprep.subr.bf16.mxu0 %v3045_v17 }
 0x896   :  { %2848 = vmatpush3.bf16.msra.mxu0 %v2847_v15 }
 0x949   :  { %v1878_v40 = vpop.f32.mrb[16].mxu0 }
 0x94a   :  { %v1879_v46 = vadd.f32 %v2106_v36, %v1878_v40  ;;  %v2194_v47 = vpop.f32.mrb[17].mxu0 }
 0x94c   :  { %2986 = vtanh.f32 %v1879_v46 }
 0x956   :  { %v2987_v48 = vpop.eup %2986 }
 0x957   :  { %2228 = vmatmul.mubr.f32.vlgmr.msra.gmra.mrb[24].mxu1 %v2987_v48 }
 0xa2a   :  { %v1972_v26 = vpop.f32.mrb[24].mxu1 }
 0xa2b   :  { %v1973_v27 = vadd.f32 %v2107_v23, %v1972_v26  ;;  %v2229_v31 = vpop.f32.mrb[25].mxu1 }
 0xa2d   :  { %2988 = vtanh.f32 %v1973_v27 }
 0xa37   :  { %v2989_v38 = vpop.eup %2988 }
 0xa38   :  { %2263 = vmatmul.mubr.f32.vlgmr.msra.gmra.mrb[18].mxu0 %v2989_v38 }
 0xb0b   :  { %v2066_v41 = vpop.f32.mrb[18].mxu0 }
 0xb0c   :  { %v2067_v50 = vadd.f32 %v2108_v39, %v2066_v41  ;;  %v2264_v54 = vpop.f32.mrb[19].mxu0 }
 0xb0e   :  { %2071 = vst.msk [vmem:[%s3721_s10] sm:$0x3] %vm2070_vm2, %v2067_v50 }
 0xb0f   :  { %2076 = vsyncpa [#allocation4], 1 }
 0xb10   :  { %2077 = vsyncpa [#allocation6], 1 }

</bundles_post_ra>
